<compile_context>
chip_gen: v7x
topology: tpu7x:2x2x1
jax: 0.10.0
libtpu: 0.0.40
codegen_flags: <defaults>
</compile_context>

<pallas_src>
import functools

import jax
import jax.numpy as jnp
from jax.experimental import pallas as pl
from jax.experimental.pallas import tpu as pltpu

NEG_SLOPE = 0.01   # nn.LeakyReLU() default negative slope
LANE = 128         # TPU lane width


def _leaky_relu(x):
    return jnp.where(x > 0, x, NEG_SLOPE * x)


def _pad_axis(a, axis, multiple):
    pad = (-a.shape[axis]) % multiple
    if pad == 0:
        return a
    widths = [(0, 0)] * a.ndim
    widths[axis] = (0, pad)
    return jnp.pad(a, widths)


def mlp_kernel(x_ref, w1_ref, b1_ref, w2_ref, b2_ref, wc_ref, bc_ref, o_ref):
    dt = x_ref.dtype  # MXU operand dtype (bf16 fast path, or f32)

    # linear1 -> bias + LeakyReLU on the f32 accumulator; dropout = identity (eval)
    h = jnp.dot(x_ref[...], w1_ref[...], preferred_element_type=jnp.float32)
    h = _leaky_relu(h + b1_ref[...].astype(jnp.float32))

    # linear2 -> bias + LeakyReLU; dropout = identity (eval)
    h = jnp.dot(h.astype(dt), w2_ref[...], preferred_element_type=jnp.float32)
    h = _leaky_relu(h + b2_ref[...].astype(jnp.float32))

    # classifier (output zero-padded to a lane-dense 128-wide slab)
    out = jnp.dot(h.astype(dt), wc_ref[...], preferred_element_type=jnp.float32)
    out = out + bc_ref[...].astype(jnp.float32)
    o_ref[...] = out.astype(o_ref.dtype)


@functools.partial(jax.jit, static_argnames=("block_rows",))
def mlp_forward(x, w1, b1, w2, b2, wc, bc, *, block_rows=256):
    n, _ = x.shape
    n_out = wc.shape[1]
    dt = x.dtype

    # Wrapper-side zero padding: rows -> multiple of block_rows,
    # feature / output dims -> multiples of 128 lanes (numerically exact).
    xp = _pad_axis(_pad_axis(x, 1, LANE), 0, block_rows)
    w1p = _pad_axis(_pad_axis(w1.astype(dt), 0, LANE), 1, LANE)
    b1p = _pad_axis(b1.astype(dt), 1, LANE)
    w2p = _pad_axis(_pad_axis(w2.astype(dt), 0, LANE), 1, LANE)
    b2p = _pad_axis(b2.astype(dt), 1, LANE)
    wcp = _pad_axis(_pad_axis(wc.astype(dt), 0, LANE), 1, LANE)
    bcp = _pad_axis(bc.astype(dt), 1, LANE)

    n_p, c_in_p = xp.shape
    hid_p = w1p.shape[1]
    n_out_p = wcp.shape[1]
    grid = (n_p // block_rows,)

    out_p = pl.pallas_call(
        mlp_kernel,
        out_shape=jax.ShapeDtypeStruct((n_p, n_out_p), dt),
        grid_spec=pltpu.PrefetchScalarGridSpec(
            num_scalar_prefetch=0,
            grid=grid,
            in_specs=[
                # x streamed over rows; full (padded) feature width in lanes
                pl.BlockSpec((block_rows, c_in_p), lambda i: (i, 0)),
                # weights / biases: constant index_map -> resident across the grid
                pl.BlockSpec((c_in_p, hid_p), lambda i: (0, 0)),
                pl.BlockSpec((1, hid_p), lambda i: (0, 0)),
                pl.BlockSpec((hid_p, hid_p), lambda i: (0, 0)),
                pl.BlockSpec((1, hid_p), lambda i: (0, 0)),
                pl.BlockSpec((hid_p, n_out_p), lambda i: (0, 0)),
                pl.BlockSpec((1, n_out_p), lambda i: (0, 0)),
            ],
            out_specs=pl.BlockSpec((block_rows, n_out_p), lambda i: (i, 0)),
        ),
        compiler_params=pltpu.CompilerParams(
            dimension_semantics=("parallel",),  # row tiles shard across TCs (v7x)
            vmem_limit_bytes=64 << 20,
        ),
    )(xp, w1p, b1p, w2p, b2p, wcp, bcp)

    # strip row / output-column padding
    return out_p[:n, :n_out]


def init_params(key, in_channels, hidden_channels, out_channels=2):
    """Deterministic init mimicking nn.Linear's uniform(-1/sqrt(fan_in), ...)."""
    ks = jax.random.split(key, 6)

    def linear(kw, kb, fan_in, fan_out):
        bound = 1.0 / jnp.sqrt(fan_in)
        # stored as [in, out] (transposed vs. PyTorch's [out, in])
        w = jax.random.uniform(kw, (fan_in, fan_out), jnp.float32, -bound, bound)
        b = jax.random.uniform(kb, (1, fan_out), jnp.float32, -bound, bound)
        return w, b

    w1, b1 = linear(ks[0], ks[1], in_channels, hidden_channels)
    w2, b2 = linear(ks[2], ks[3], hidden_channels, hidden_channels)
    wc, bc = linear(ks[4], ks[5], hidden_channels, out_channels)
    return w1, b1, w2, b2, wc, bc


def ref_forward(xv, ps, dt):
    w1r, b1r, w2r, b2r, wcr, bcr = [p.astype(dt) for p in ps]
    hp = jax.lax.Precision.HIGHEST
    h = jnp.dot(xv.astype(dt), w1r, preferred_element_type=jnp.float32, precision=hp)
    h = _leaky_relu(h + b1r.astype(jnp.float32))
    h = jnp.dot(h.astype(dt), w2r, preferred_element_type=jnp.float32, precision=hp)
    h = _leaky_relu(h + b2r.astype(jnp.float32))
    o = jnp.dot(h.astype(dt), wcr, preferred_element_type=jnp.float32, precision=hp)
    return o + bcr.astype(jnp.float32)


if __name__ == "__main__":
    key = jax.random.PRNGKey(0)
    k_x, k_p = jax.random.split(key)

    # Feature dims match the module defaults (in=1024, hidden=256, out=2);
    # a modest row count keeps compile + run quick (grid = 2 steps at block_rows=128).
    N, IN_CH, HID = 256, 1024, 256
    x = jax.random.normal(k_x, (N, IN_CH), jnp.float32)
    params = init_params(k_p, IN_CH, HID)

    # f32 path (matches the PyTorch module's default dtype / eval-mode forward)
    out_f32 = jax.block_until_ready(mlp_forward(x, *params, block_rows=128))
    ref_f32 = ref_forward(x, params, jnp.float32)
    assert out_f32.shape == (N, 2)
    assert jnp.allclose(out_f32, ref_f32, atol=1e-2, rtol=1e-2)

    # bf16 fast path (MXU bf16 operands, f32 accumulation)
    xb = x.astype(jnp.bfloat16)
    pb = tuple(p.astype(jnp.bfloat16) for p in params)
    out_bf16 = jax.block_until_ready(mlp_forward(xb, *pb, block_rows=128))
    ref_bf16 = ref_forward(xb, pb, jnp.bfloat16)
    assert out_bf16.shape == (N, 2)
    assert jnp.allclose(out_bf16.astype(jnp.float32), ref_bf16, atol=1e-1, rtol=1e-1)

    print("KERNEL_OK")
</pallas_src>

<mosaic_0001>
module attributes {stable_mosaic.version = 11 : i64} {
  func.func @mlp_kernel(%arg0: i32, %arg1: memref<128x1024xf32, #tpu.memory_space<vmem>>, %arg2: memref<1024x256xf32, #tpu.memory_space<vmem>>, %arg3: memref<1x256xf32, #tpu.memory_space<vmem>>, %arg4: memref<256x256xf32, #tpu.memory_space<vmem>>, %arg5: memref<1x256xf32, #tpu.memory_space<vmem>>, %arg6: memref<256x128xf32, #tpu.memory_space<vmem>>, %arg7: memref<1x128xf32, #tpu.memory_space<vmem>>, %arg8: memref<128x128xf32, #tpu.memory_space<vmem>>) attributes {dimension_semantics = [#tpu.dimension_semantics<parallel>], iteration_bounds = array<i64: 2>, scalar_prefetch = 0 : i64, scratch_operands = 0 : i64, tpu.core_type = #tpu.core_type<tc>, window_params = [{transform_indices = @transform_0, window_bounds = array<i64: 128, 1024>}, {pipeline_mode = #tpu.pipeline_mode<synchronous>, transform_indices = @transform_1, window_bounds = array<i64: 1024, 256>}, {pipeline_mode = #tpu.pipeline_mode<synchronous>, transform_indices = @transform_2, window_bounds = array<i64: 1, 256>}, {pipeline_mode = #tpu.pipeline_mode<synchronous>, transform_indices = @transform_3, window_bounds = array<i64: 256, 256>}, {pipeline_mode = #tpu.pipeline_mode<synchronous>, transform_indices = @transform_4, window_bounds = array<i64: 1, 256>}, {pipeline_mode = #tpu.pipeline_mode<synchronous>, transform_indices = @transform_5, window_bounds = array<i64: 256, 128>}, {pipeline_mode = #tpu.pipeline_mode<synchronous>, transform_indices = @transform_6, window_bounds = array<i64: 1, 128>}, {transform_indices = @transform_7, window_bounds = array<i64: 128, 128>}]} {
    %c0 = arith.constant 0 : index
    %c0_0 = arith.constant 0 : index
    %0 = vector.load %arg1[%c0, %c0_0] : memref<128x1024xf32, #tpu.memory_space<vmem>>, vector<128x1024xf32>
    %c0_1 = arith.constant 0 : index
    %c0_2 = arith.constant 0 : index
    %1 = vector.load %arg2[%c0_1, %c0_2] : memref<1024x256xf32, #tpu.memory_space<vmem>>, vector<1024x256xf32>
    %cst = arith.constant dense<0.000000e+00> : vector<128x256xf32>
    %2 = tpu.matmul %0, %1, %cst {dimension_numbers = #tpu.dot_dimension_numbers<[1], [0], [0], [1], [0, 0, 1, 1], [], []>} : vector<128x1024xf32>, vector<1024x256xf32>, vector<128x256xf32> -> vector<128x256xf32>
    %c0_3 = arith.constant 0 : index
    %c0_4 = arith.constant 0 : index
    %3 = vector.load %arg3[%c0_3, %c0_4] : memref<1x256xf32, #tpu.memory_space<vmem>>, vector<1x256xf32>
    %4 = vector.broadcast %3 : vector<1x256xf32> to vector<128x256xf32>
    %5 = arith.addf %2, %4 : vector<128x256xf32>
    %cst_5 = arith.constant 0.000000e+00 : f32
    %6 = vector.broadcast %cst_5 : f32 to vector<128x256xf32>
    %7 = arith.cmpf ogt, %5, %6 : vector<128x256xf32>
    %cst_6 = arith.constant 0.00999999977 : f32
    %8 = vector.broadcast %cst_6 : f32 to vector<128x256xf32>
    %9 = arith.mulf %8, %5 : vector<128x256xf32>
    %10 = arith.select %7, %5, %9 : vector<128x256xi1>, vector<128x256xf32>
    %c0_7 = arith.constant 0 : index
    %c0_8 = arith.constant 0 : index
    %11 = vector.load %arg4[%c0_7, %c0_8] : memref<256x256xf32, #tpu.memory_space<vmem>>, vector<256x256xf32>
    %cst_9 = arith.constant dense<0.000000e+00> : vector<128x256xf32>
    %12 = tpu.matmul %10, %11, %cst_9 {dimension_numbers = #tpu.dot_dimension_numbers<[1], [0], [0], [1], [0, 0, 1, 1], [], []>} : vector<128x256xf32>, vector<256x256xf32>, vector<128x256xf32> -> vector<128x256xf32>
    %c0_10 = arith.constant 0 : index
    %c0_11 = arith.constant 0 : index
    %13 = vector.load %arg5[%c0_10, %c0_11] : memref<1x256xf32, #tpu.memory_space<vmem>>, vector<1x256xf32>
    %14 = vector.broadcast %13 : vector<1x256xf32> to vector<128x256xf32>
    %15 = arith.addf %12, %14 : vector<128x256xf32>
    %cst_12 = arith.constant 0.000000e+00 : f32
    %16 = vector.broadcast %cst_12 : f32 to vector<128x256xf32>
    %17 = arith.cmpf ogt, %15, %16 : vector<128x256xf32>
    %cst_13 = arith.constant 0.00999999977 : f32
    %18 = vector.broadcast %cst_13 : f32 to vector<128x256xf32>
    %19 = arith.mulf %18, %15 : vector<128x256xf32>
    %20 = arith.select %17, %15, %19 : vector<128x256xi1>, vector<128x256xf32>
    %c0_14 = arith.constant 0 : index
    %c0_15 = arith.constant 0 : index
    %21 = vector.load %arg6[%c0_14, %c0_15] : memref<256x128xf32, #tpu.memory_space<vmem>>, vector<256x128xf32>
    %cst_16 = arith.constant dense<0.000000e+00> : vector<128x128xf32>
    %22 = tpu.matmul %20, %21, %cst_16 {dimension_numbers = #tpu.dot_dimension_numbers<[1], [0], [0], [1], [0, 0, 1, 1], [], []>} : vector<128x256xf32>, vector<256x128xf32>, vector<128x128xf32> -> vector<128x128xf32>
    %c0_17 = arith.constant 0 : index
    %c0_18 = arith.constant 0 : index
    %23 = vector.load %arg7[%c0_17, %c0_18] : memref<1x128xf32, #tpu.memory_space<vmem>>, vector<1x128xf32>
    %24 = vector.broadcast %23 : vector<1x128xf32> to vector<128x128xf32>
    %25 = arith.addf %22, %24 : vector<128x128xf32>
    %c0_19 = arith.constant 0 : index
    %c0_20 = arith.constant 0 : index
    %26 = vector.load %arg8[%c0_19, %c0_20] : memref<128x128xf32, #tpu.memory_space<vmem>>, vector<128x128xf32>
    tpu.vector_store %arg8[%c0_19, %c0_20], %25 {strides = array<i32>} : memref<128x128xf32, #tpu.memory_space<vmem>>, vector<128x128xf32>,
    return
  }
  func.func @transform_0(%arg0: i32) -> (i32, i32) {
    %c0_i32 = arith.constant 0 : i32
    %c0_i32_0 = arith.constant 0 : i32
    return %arg0, %c0_i32 : i32, i32
  }
  func.func @transform_1(%arg0: i32) -> (i32, i32) {
    %c0_i32 = arith.constant 0 : i32
    %c0_i32_0 = arith.constant 0 : i32
    %c0_i32_1 = arith.constant 0 : i32
    return %c0_i32, %c0_i32_0 : i32, i32
  }
  func.func @transform_2(%arg0: i32) -> (i32, i32) {
    %c0_i32 = arith.constant 0 : i32
    %c0_i32_0 = arith.constant 0 : i32
    %c0_i32_1 = arith.constant 0 : i32
    return %c0_i32, %c0_i32_0 : i32, i32
  }
  func.func @transform_3(%arg0: i32) -> (i32, i32) {
    %c0_i32 = arith.constant 0 : i32
    %c0_i32_0 = arith.constant 0 : i32
    %c0_i32_1 = arith.constant 0 : i32
    return %c0_i32, %c0_i32_0 : i32, i32
  }
  func.func @transform_4(%arg0: i32) -> (i32, i32) {
    %c0_i32 = arith.constant 0 : i32
    %c0_i32_0 = arith.constant 0 : i32
    %c0_i32_1 = arith.constant 0 : i32
    return %c0_i32, %c0_i32_0 : i32, i32
  }
  func.func @transform_5(%arg0: i32) -> (i32, i32) {
    %c0_i32 = arith.constant 0 : i32
    %c0_i32_0 = arith.constant 0 : i32
    %c0_i32_1 = arith.constant 0 : i32
    return %c0_i32, %c0_i32_0 : i32, i32
  }
  func.func @transform_6(%arg0: i32) -> (i32, i32) {
    %c0_i32 = arith.constant 0 : i32
    %c0_i32_0 = arith.constant 0 : i32
    %c0_i32_1 = arith.constant 0 : i32
    return %c0_i32, %c0_i32_0 : i32, i32
  }
  func.func @transform_7(%arg0: i32) -> (i32, i32) {
    %c0_i32 = arith.constant 0 : i32
    %c0_i32_0 = arith.constant 0 : i32
    return %arg0, %c0_i32 : i32, i32
  }
}

</mosaic_0001>

<bundles_post_ra>
// kernel: mlp_forward.1
= control target key start
LH: loop header
LB: loop body
LE: loop exit
PB: predicated region body
PF: predicated region fallthrough
CT: control target
= control target key end

     0   :  { %s3889_s0 = inlined_call_operand.hbm [shape: f32[256,1024], index: 0, kind: input, shape index: {}]   ;;  %s3890_s1 = inlined_call_operand.hbm [shape: f32[1024,256], index: 1, kind: input, shape index: {}]   ;;  %s3891_s2 = inlined_call_operand.hbm [shape: f32[1,256], index: 2, kind: input, shape index: {}]   ;;  %s3892_s3 = inlined_call_operand.hbm [shape: f32[256,256], index: 3, kind: input, shape index: {}]   ;;  %s3893_s4 = inlined_call_operand.hbm [shape: f32[1,256], index: 4, kind: input, shape index: {}]   ;;  %s3894_s5 = inlined_call_operand.hbm [shape: f32[256,128], index: 5, kind: input, shape index: {}]   ;;  %s3895_s6 = inlined_call_operand.hbm [shape: f32[1,128], index: 6, kind: input, shape index: {}]   ;;  %s3896_s7 = inlined_call_operand.hbm [shape: f32[256,128], index: 7, kind: output, shape index: {}]  }
   0x1   :  { %3900 = sst [smem:[#allocation20_spill]] %s3890_s1 }
   0x2   :  { %12 = vsyncpa [#allocation3], 0 }
   0x3   :  { %14 = vsyncpa [#allocation3 + $0x1], 0 }
   0x4   :  { %15 = vsyncpa [#allocation6], 0 }
   0x5   :  { %16 = vsyncpa [#allocation9], 0 }
   0x6   :  { %17 = vsyncpa [#allocation12], 0 }
   0x7   :  { %18 = vsyncpa [#allocation4], 0 }
   0x8   :  { %20 = vsyncpa [#allocation4 + $0x1], 0  ;;  %s3234_s24 = smov 0   ;;  %s3236_s25 = smov 0  }
   0x9   :  { %s3238_s26 = smov 0   ;;  %s3240_s27 = smov 0  }
   0xa LB: > { %s3178_s28 = smov [#allocation5]   ;;  %s3255_s30 = sadd.s32 4294967295, %s3176_s27   ;;  %s3176_s27 = sphi %s3240_s27, %s3924_s27   ;;  %s3172_s26 = sphi %s3238_s26, %s3923_s26   ;;  %s3168_s25 = sphi %s3236_s25, %s3922_s25   ;;  %s3164_s24 = sphi %s3234_s24, %s3921_s24  }
   0xb   : > { %s221_s29 = sshll.u32 %s3178_s28, 4  ;;  %p2195_p0 = scmp.ge.s32.totalorder %s3176_s27, 1  ;;  %s3260_s29 = int_to_ptr.vmem [resolvable:$true] %s221_s29 }
   0xc   : > { %p3897_p1 = scmp.eq.s32.totalorder %s3255_s30, 0  ;;  %p209_p2 = scmp.lt.s32.totalorder %s3176_s27, 3 }
   0xd   : > { %s3179_s9 = smov [#allocation8]   ;;  %s3180_s12 = smov [#allocation11]  }
   0xe   : > { %p3262_p3 = pnand %p2195_p0, %p209_p2  ;;  %s245_s10 = sshll.u32 %s3179_s9, 4  ;;  %s3275_s10 = int_to_ptr.vmem [resolvable:$true] %s245_s10 }
   0xf   : > { %s269_s13 = sshll.u32 %s3180_s12, 4  ;;  %s3903_s1 = sld [smem:[#allocation20_spill]]  ;;  %s3277_s13 = int_to_ptr.vmem [resolvable:$true] %s269_s13 }
  0x10   : > { %s3901_s8 = scalar_select %p3262_p3, 1, 0 }
  0x11   : > { %p2813_p5 = pneg %p3262_p3 }
  0x13   : > { %p3271_p6 = pnand %p2813_p5, %p3897_p1 }
  0x15   : > { %s2900_s16 = scalar_lea.hbm %s3903_s1, 32768  ;;  %p3287_p8 = pneg %p3271_p6 }
  0x16   : > { %p2901_p7 = scmp.ne.s32.totalorder %s3903_s1, %s2900_s16  ;;  %p2907_p11 = scmp.lt.u32.totalorder %s2900_s16, %s3903_s1 }
  0x18   : > { %p2903_p9 = pnand %p3287_p8, %p2901_p7 }
  0x1a   : > { %p2904_p10 = pneg %p2903_p9 }
  0x1c   : > { %p2909_p12 = pnand %p2907_p11, %p2904_p10 }
  0x1e   : > { %2912 = shalt.err (!%p2909_p12)
}
  0x1f   : > { %s2913_s22 = scalar_lea.vmem %s3260_s29, 32768  ;;  %p2921_p5 = scmp.lt.s32.totalorder %s3260_s29, %s3260_s29 }
  0x20   : > { %p2914_p13 = scmp.ne.s32.totalorder %s3260_s29, %s2913_s22  ;;  %p2922_p4 = scmp.lt.s32.totalorder %s2913_s22, %s2913_s22 }
  0x22   : > { %p2916_p0 = pnand %p2914_p13, %p3287_p8  ;;  %p2923_p7 = por %p2922_p4, %p2921_p5 }
  0x24   : > { %p2917_p2 = pneg %p2916_p0 }
  0x26   : > { %p2924_p9 = pnand %p2923_p7, %p2917_p2 }
  0x28   : > { %2927 = shalt.err (!%p2924_p9)
}
  0x29   : > { %s3181_s23 = smov 256   ;;  %s3182_s28 = smov 16  }
  0x2a   : > { %2816 = dma.hbm_to_vmem [thread:$0]  (!%p3271_p6), %s3903_s1, 32768, %s3260_s29, [#allocation6], %s3181_s23, %s3181_s23, %s3182_s28  }
  0x2b   : > { %s2928_s16 = scalar_lea.hbm %s3892_s3, 8192 }
  0x2c   : > { %p2929_p4 = scmp.ne.s32.totalorder %s3892_s3, %s2928_s16  ;;  %p2935_p12 = scmp.lt.u32.totalorder %s2928_s16, %s3892_s3 }
  0x2e   : > { %p2931_p10 = pnand %p2929_p4, %p3287_p8 }
  0x30   : > { %p2932_p11 = pneg %p2931_p10 }
  0x32   : > { %p2937_p13 = pnand %p2935_p12, %p2932_p11 }
  0x34   : > { %2940 = shalt.err (!%p2937_p13)
}
  0x35   : > { %s2941_s29 = scalar_lea.vmem %s3275_s10, 8192  ;;  %p2949_p7 = scmp.lt.s32.totalorder %s3275_s10, %s3275_s10 }
  0x36   : > { %p2942_p0 = scmp.ne.s32.totalorder %s3275_s10, %s2941_s29  ;;  %p2950_p9 = scmp.lt.s32.totalorder %s2941_s29, %s2941_s29 }
  0x38   : > { %p2944_p2 = pnand %p2942_p0, %p3287_p8  ;;  %p2951_p4 = por %p2950_p9, %p2949_p7 }
  0x3a   : > { %p2945_p5 = pneg %p2944_p2 }
  0x3c   : > { %p2952_p10 = pnand %p2951_p4, %p2945_p5 }
  0x3e   : > { %2955 = shalt.err (!%p2952_p10)
}
  0x3f   : > { %2822 = dma.hbm_to_vmem [thread:$0]  (!%p3271_p6), %s3892_s3, 8192, %s3275_s10, [#allocation9], %s3181_s23, %s3181_s23, %s3182_s28  }
  0x40   : > { %s2956_s15 = scalar_lea.hbm %s3894_s5, 4096 }
  0x41   : > { %p2957_p11 = scmp.ne.s32.totalorder %s3894_s5, %s2956_s15  ;;  %p2963_p0 = scmp.lt.u32.totalorder %s2956_s15, %s3894_s5 }
  0x43   : > { %p2959_p12 = pnand %p2957_p11, %p3287_p8 }
  0x45   : > { %p2960_p13 = pneg %p2959_p12 }
  0x47   : > { %p2965_p2 = pnand %p2963_p0, %p2960_p13 }
  0x49   : > { %2968 = shalt.err (!%p2965_p2)
}
  0x4a   : > { %s2969_s10 = scalar_lea.vmem %s3277_s13, 4096  ;;  %p2977_p4 = scmp.lt.s32.totalorder %s3277_s13, %s3277_s13 }
  0x4b   : > { %p2970_p5 = scmp.ne.s32.totalorder %s3277_s13, %s2969_s10  ;;  %p2978_p10 = scmp.lt.s32.totalorder %s2969_s10, %s2969_s10 }
  0x4d   : > { %p2972_p7 = pnand %p2970_p5, %p3287_p8  ;;  %p2979_p11 = por %p2978_p10, %p2977_p4 }
  0x4f   : > { %p2973_p9 = pneg %p2972_p7 }
  0x51   : > { %p2980_p12 = pnand %p2979_p11, %p2973_p9 }
  0x53   : > { %2983 = shalt.err (!%p2980_p12)
}
  0x54   : > { %s3183_s23 = smov 128   ;;  %s3184_s28 = smov 8  }
  0x55   : > { %2828 = dma.hbm_to_vmem [thread:$0]  (!%p3271_p6), %s3894_s5, 4096, %s3277_s13, [#allocation12], %s3183_s23, %s3183_s23, %s3184_s28  }
  0x56   : > { %s3185_s22 = smov [#allocation7]   ;;  %s3186_s12 = smov [#allocation10]  }
  0x57   : > { %s235_s9 = sshll.u32 %s3185_s22, 4  ;;  %s259_s14 = sshll.u32 %s3186_s12, 4  ;;  %s236_s9 = int_to_ptr.vmem [resolvable:$true] %s235_s9  ;;  %s260_s14 = int_to_ptr.vmem [resolvable:$true] %s259_s14 }
  0x58   : > { %s2984_s17 = scalar_lea.hbm %s3891_s2, 32 }
  0x59   : > { %p2985_p13 = scmp.ne.s32.totalorder %s3891_s2, %s2984_s17  ;;  %p2991_p5 = scmp.lt.u32.totalorder %s2984_s17, %s3891_s2 }
  0x5b   : > { %p2987_p0 = pnand %p2985_p13, %p3287_p8 }
  0x5d   : > { %p2988_p2 = pneg %p2987_p0 }
  0x5f   : > { %p2993_p7 = pnand %p2991_p5, %p2988_p2 }
  0x61   : > { %2996 = shalt.err (!%p2993_p7)
}
  0x62   : > { %s2997_s13 = scalar_lea.vmem %s236_s9, 32  ;;  %p3005_p11 = scmp.lt.s32.totalorder %s236_s9, %s236_s9 }
  0x63   : > { %p2998_p9 = scmp.ne.s32.totalorder %s236_s9, %s2997_s13  ;;  %p3006_p12 = scmp.lt.s32.totalorder %s2997_s13, %s2997_s13 }
  0x65   : > { %p3000_p4 = pnand %p2998_p9, %p3287_p8  ;;  %p3007_p1 = por %p3006_p12, %p3005_p11 }
  0x67   : > { %p3001_p10 = pneg %p3000_p4 }
  0x69   : > { %p3008_p3 = pnand %p3007_p1, %p3001_p10 }
  0x6b   : > { %3011 = shalt.err (!%p3008_p3)
}
  0x6c   : > { %2819 = dma.hbm_to_vmem [thread:$0]  (!%p3271_p6), %s3891_s2, 32, %s236_s9, [#allocation6]  }
  0x6d   : > { %s3012_s29 = scalar_lea.hbm %s3893_s4, 32 }
  0x6e   : > { %p3013_p13 = scmp.ne.s32.totalorder %s3893_s4, %s3012_s29  ;;  %p3019_p3 = scmp.lt.u32.totalorder %s3012_s29, %s3893_s4 }
  0x70   : > { %p3015_p0 = pnand %p3013_p13, %p3287_p8 }
  0x72   : > { %p3016_p1 = pneg %p3015_p0 }
  0x74   : > { %p3021_p2 = pnand %p3019_p3, %p3016_p1 }
  0x76   : > { %3024 = shalt.err (!%p3021_p2)
}
  0x77   : > { %s3025_s17 = scalar_lea.vmem %s260_s14, 32  ;;  %p3033_p4 = scmp.lt.s32.totalorder %s260_s14, %s260_s14 }
  0x78   : > { %p3026_p5 = scmp.ne.s32.totalorder %s260_s14, %s3025_s17  ;;  %p3034_p10 = scmp.lt.s32.totalorder %s3025_s17, %s3025_s17 }
  0x7a   : > { %p3028_p7 = pnand %p3026_p5, %p3287_p8  ;;  %p3035_p11 = por %p3034_p10, %p3033_p4 }
  0x7c   : > { %p3029_p9 = pneg %p3028_p7 }
  0x7e   : > { %p3036_p12 = pnand %p3035_p11, %p3029_p9 }
  0x80   : > { %3039 = shalt.err (!%p3036_p12)
}
  0x81   : > { %2825 = dma.hbm_to_vmem [thread:$0]  (!%p3271_p6), %s3893_s4, 32, %s260_s14, [#allocation9]  }
  0x82   : > { %s3187_s20 = smov [#allocation13]   ;;  %s3040_s28 = scalar_lea.hbm %s3895_s6, 16 }
  0x83   : > { %s283_s10 = sshll.u32 %s3187_s20, 4  ;;  %p3041_p13 = scmp.ne.s32.totalorder %s3895_s6, %s3040_s28  ;;  %s284_s10 = int_to_ptr.vmem [resolvable:$true] %s283_s10 }
  0x84   : > { %p3047_p3 = scmp.lt.u32.totalorder %s3040_s28, %s3895_s6 }
  0x85   : > { %p3043_p0 = pnand %p3041_p13, %p3287_p8 }
  0x87   : > { %p3044_p1 = pneg %p3043_p0 }
  0x89   : > { %p3049_p2 = pnand %p3047_p3, %p3044_p1 }
  0x8b   : > { %3052 = shalt.err (!%p3049_p2)
}
  0x8c   : > { %s3053_s14 = scalar_lea.vmem %s284_s10, 16  ;;  %s3060_s12 = scalar_lea.vmem %s284_s10, 32 }
  0x8d   : > { %p3054_p5 = scmp.ne.s32.totalorder %s284_s10, %s3053_s14  ;;  %p3061_p4 = scmp.lt.s32.totalorder %s284_s10, %s284_s10 }
  0x8e   : > { %p3062_p10 = scmp.lt.s32.totalorder %s3060_s12, %s3053_s14 }
  0x8f   : > { %p3056_p7 = pnand %p3054_p5, %p3287_p8 }
  0x90   : > { %p3063_p11 = por %p3062_p10, %p3061_p4 }
  0x91   : > { %p3057_p9 = pneg %p3056_p7 }
  0x93   : > { %p3064_p12 = pnand %p3063_p11, %p3057_p9 }
  0x95   : > { %3067 = shalt.err (!%p3064_p12)
}
  0x96   : > { %2831 = dma.hbm_to_vmem [thread:$0]  (!%p3271_p6), %s3895_s6, 16, %s284_s10, [#allocation12]  }
  0x97   : > { %s2194_s19 = sadd.s32 4294967294, %s3176_s27   ;;  %s3410_s11 = sadd.s32 1, %s3176_s27  }
  0x98   : > { %s30_s17 = ssub.s32 %s3176_s27, %s3410_s11  ;;  %s33_s9 = sadd.s32 1, %s3172_s26 }
  0x99   : > { %p31_p8 = scmp.eq.s32.totalorder %s30_s17, 0  ;;  %p40_p13 = scmp.ne.s32.totalorder %s3172_s26, %s3168_s25 }
  0x9a   : > { %p41_p0 = scmp.eq.s32.totalorder %s3176_s27, 0  ;;  %p46_p1 = scmp.ne.s32.totalorder %s3168_s25, %s3164_s24 }
  0x9b   : > { %s3421_s18 = scalar_select %p31_p8, %s3172_s26, %s33_s9  }
  0x9c   : > { %p3423_p3 = por %p41_p0, %p40_p13  ;;  %p3906_p2 = scmp.eq.s32.totalorder %s3255_s30, 0 }
  0x9d   : > { %p196_p5 = scmp.eq.s32.totalorder %s3255_s30, 1  ;;  %p202_p7 = scmp.eq.s32.totalorder %s2194_s19, 1 }
  0x9e   : > { %p3429_p6 = por %p3906_p2, %p46_p1  ;;  %p2846_p9 = scmp.lt.s32.totalorder %s3176_s27, 2 }
  0x9f   : > { %s294_s13 = sand.u32 1, %s3172_s26   ;;  %p3436_p4 = por %p196_p5, %p40_p13 }
  0xa0   : > { %p3440_p10 = por %p202_p7, %p46_p1  ;;  %s2203_s1 = sshll.u32 %s294_s13, 10 }
  0xa1   : > { %s3908_s23 = scalar_select %p3436_p4, 1, 0 }
  0xa2   : > { %s3909_s28 = scalar_select %p3440_p10, 1, 0 }
  0xa3   : > { %s2223_s21 = sshll.u32 %s3176_s27, 14  ;;  %s298_s12 = scalar_lea.vmem [#allocation2], %s2203_s1 }
  0xa4   : > { %s3448_s14 = scalar_lea.hbm %s3889_s0, %s2223_s21  ;;  %s306_s15 = sshll.u32 %s298_s12, 4  ;;  %s3450_s15 = int_to_ptr.vmem [resolvable:$true] %s306_s15 }
  0xa5   : > { %p3454_p11 = pnand %p2846_p9, %p3423_p3  ;;  %s3458_s19 = scalar_lea.sflag [#allocation3], %s294_s13 }
  0xa6   : > { %s3068_s17 = scalar_lea.hbm %s3448_s14, 16384  ;;  %s3073_s20 = scalar_lea.hbm %s3889_s0, 32768 }
  0xa7   : > { %p3069_p12 = scmp.ne.s32.totalorder %s3448_s14, %s3068_s17  ;;  %p3070_p8 = pneg %p3454_p11 }
  0xa8   : > { %p3074_p1 = scmp.lt.u32.totalorder %s3448_s14, %s3889_s0  ;;  %p3075_p3 = scmp.lt.u32.totalorder %s3073_s20, %s3068_s17 }
  0xa9   : > { %p3071_p13 = pnand %p3070_p8, %p3069_p12  ;;  %p3077_p5 = scmp.lt.u32.totalorder %s3068_s17, %s3448_s14 }
  0xaa   : > { %p3076_p2 = por %p3075_p3, %p3074_p1 }
  0xab   : > { %p3072_p0 = pneg %p3071_p13 }
  0xac   : > { %p3078_p7 = por %p3077_p5, %p3076_p2 }
  0xae   : > { %p3079_p9 = pnand %p3078_p7, %p3072_p0 }
  0xb0   : > { %3082 = shalt.err (!%p3079_p9)
}
  0xb1   : > { %s3083_s13 = scalar_lea.vmem %s3450_s15, 16384  ;;  %s3188_s22 = smov [#allocation2]  }
  0xb2   : > { %p3084_p12 = scmp.ne.s32.totalorder %s3450_s15, %s3083_s13  ;;  %s3088_s12 = sshll.u32 %s3188_s22, 4  ;;  %s3089_s12 = int_to_ptr.vmem [resolvable:$false] %s3088_s12 }
  0xb3   : > { %s3090_s9 = scalar_lea.vmem %s3089_s12, 32768  ;;  %p3091_p4 = scmp.lt.s32.totalorder %s3450_s15, %s3089_s12 }
  0xb4   : > { %p3086_p13 = pnand %p3084_p12, %p3070_p8  ;;  %p3092_p1 = scmp.lt.s32.totalorder %s3090_s9, %s3083_s13 }
  0xb6   : > { %p3087_p10 = pneg %p3086_p13  ;;  %p3093_p3 = por %p3092_p1, %p3091_p4 }
  0xb8   : > { %p3094_p2 = pnand %p3093_p3, %p3087_p10 }
  0xba   : > { %3097 = shalt.err (!%p3094_p2)
}
  0xbb   : > { %s3189_s17 = smov 1024   ;;  %s3190_s1 = smov 64  }
  0xbc   : > { %2835 = dma.hbm_to_vmem [thread:$0]  (!%p3454_p11), %s3448_s14, 16384, %s3450_s15, %s3458_s19, %s3189_s17, %s3189_s17, %s3190_s1  }
  0xbd   : > { %p3911_p8 = scmp.ne.s32.totalorder %s3901_s8, 0 }
  0xbe   : > { %s3489_s20 = sand.u32 (!%p3911_p8), 1, %s3168_s25  }
  0xbf   : > { %318 = sbr.rel (%p3911_p8) target bundleno = 1134 (0x46e), region = 48  ;;  %s2208_s21 = sshll.u32 (!%p3911_p8), %s3489_s20, 10 }
  0xc0   : > { %s321_s29 = scalar_lea.sflag (!%p3911_p8), [#allocation3], %s3489_s20  ;;  %s3493_s13 = scalar_lea.vmem (!%p3911_p8), [#allocation2], %s2208_s21 }
  0xc6   : > { %3143 = dma.done.wait (%p3429_p6), %s321_s29, 16384  }
  0xc7   : > { %3145 = vsyncadd (%p3429_p6), %s321_s29, 4294950912  ;;  %p3912_p4 = scmp.eq.s32.totalorder %s3255_s30, 0 }
  0xc9   : > { %3147 = dma.done.wait (%p3912_p4), [#allocation6], 32800   ;;  %p3913_p10 = pmov %p3912_p4 }
  0xca   : > { %p3914_p11 = pmov %p3912_p4 }
  0xcb   : > { %3149 = vsyncadd (%p3913_p10), [#allocation6], 4294934496 }
  0xcc   : > { %3151 = dma.done.wait (%p3914_p11), [#allocation9], 8224   ;;  %p3915_p0 = pmov %p3912_p4 }
  0xce   : > { %3153 = vsyncadd (%p3915_p0), [#allocation9], 4294959072  ;;  %p3916_p5 = pmov %p3915_p0 }
  0xcf   : > { %p3917_p7 = pmov %p3915_p0 }
  0xd0   : > { %3155 = dma.done.wait (%p3916_p5), [#allocation12], 4112  }
  0xd1   : > { %3157 = vsyncadd (%p3917_p7), [#allocation12], 4294963184  ;;  %v574_v0 = vld [vmem:[#allocation5 + $0x208] sm:$0xff]  ;;  %v576_v1 = vld [vmem:[#allocation5 + $0x218] sm:$0xff]  ;;  %s2215_s8 = sshll.u32 %s3489_s20, 7  ;;  %s2224_s14 = sshll.u32 %s3255_s30, 11 }
  0xd2   : > { %v573_v2 = vld [vmem:[#allocation5 + $0x200] sm:$0xff]  ;;  %v2369_v3 = vpack.c.bf16 %v576_v1, %v574_v0  ;;  %v575_v4 = vld [vmem:[#allocation5 + $0x210] sm:$0xff]  ;;  %v578_v5 = vld [vmem:[#allocation5 + $0x228] sm:$0xff]  ;;  %s3805_s10 = scalar_lea.vmem [#allocation14], %s2215_s8  ;;  %s3841_s22 = scalar_lea.hbm %s3896_s7, %s2224_s14 }
  0xd3   : > { %v580_v6 = vld [vmem:[#allocation5 + $0x238] sm:$0xff]  ;;  %v2371_v7 = vpack.c.bf16 %v575_v4, %v573_v2  ;;  %v577_v9 = vld [vmem:[#allocation5 + $0x220] sm:$0xff]  ;;  %v579_v10 = vld [vmem:[#allocation5 + $0x230] sm:$0xff]  ;;  %s2064_s15 = sshll.u32 %s3805_s10, 4  ;;  %s2051_s12 = scalar_lea.sflag [#allocation4], %s3489_s20  ;;  %s3843_s15 = int_to_ptr.vmem [resolvable:$true] %s2064_s15 }
  0xd4   : > { %v2373_v8 = vpack.c.bf16 %v580_v6, %v578_v5  ;;  %v582_v11 = vld [vmem:[#allocation5 + $0x248] sm:$0xff]  ;;  %2370 = vmatprep.subr.bf16.mxu0 %v2369_v3  ;;  %v584_v12 = vld [vmem:[#allocation5 + $0x258] sm:$0xff]  ;;  %v2375_v13 = vpack.c.bf16 %v579_v10, %v577_v9  ;;  %v581_v15 = vld [vmem:[#allocation5 + $0x240] sm:$0xff]  ;;  %s3098_s9 = scalar_lea.vmem %s3843_s15, 2048  ;;  %p3918_p9 = scmp.ne.s32.totalorder %s3908_s23, 0 }
  0xd5   : > { %2372 = vmatpush1.bf16.msra.mxu0 %v2371_v7  ;;  %v2377_v14 = vpack.c.bf16 %v584_v12, %v582_v11  ;;  %v583_v16 = vld [vmem:[#allocation5 + $0x250] sm:$0xff]  ;;  %v586_v17 = vld [vmem:[#allocation5 + $0x268] sm:$0xff]  ;;  %v588_v18 = vld [vmem:[#allocation5 + $0x278] sm:$0xff]  ;;  %p3099_p6 = scmp.ne.s32.totalorder %s3843_s15, %s3098_s9  ;;  %s3191_s30 = smov [#allocation14]  }
  0xd6   : > { %2374 = vmatprep.subr.bf16.mxu0 %v2373_v8  ;;  %v2379_v19 = vpack.c.bf16 %v583_v16, %v581_v15  ;;  %v2381_v20 = vpack.c.bf16 %v588_v18, %v586_v17  ;;  %v585_v21 = vld [vmem:[#allocation5 + $0x260] sm:$0xff]  ;;  %v587_v22 = vld [vmem:[#allocation5 + $0x270] sm:$0xff]  ;;  %v590_v23 = vld [vmem:[#allocation5 + $0x288] sm:$0xff]  ;;  %s3102_s17 = sshll.u32 %s3191_s30, 4  ;;  %s3103_s17 = int_to_ptr.vmem [resolvable:$false] %s3102_s17 }
  0xd7   : > { %v592_v24 = vld [vmem:[#allocation5 + $0x298] sm:$0xff]  ;;  %v2383_v25 = vpack.c.bf16 %v587_v22, %v585_v21  ;;  %v589_v27 = vld [vmem:[#allocation5 + $0x280] sm:$0xff]  ;;  %v591_v28 = vld [vmem:[#allocation5 + $0x290] sm:$0xff]  ;;  %p3100_p12 = pnand %p3099_p6, %p3918_p9  ;;  %s3104_s1 = scalar_lea.vmem %s3103_s17, 4096 }
  0xd8   : > { %v2385_v26 = vpack.c.bf16 %v592_v24, %v590_v23  ;;  %v594_v29 = vld [vmem:[#allocation5 + $0x2a8] sm:$0xff]  ;;  %v596_v30 = vld [vmem:[#allocation5 + $0x2b8] sm:$0xff]  ;;  %v2387_v31 = vpack.c.bf16 %v591_v28, %v589_v27  ;;  %v593_v33 = vld [vmem:[#allocation5 + $0x2a0] sm:$0xff]  ;;  %p3105_p1 = scmp.lt.s32.totalorder %s3843_s15, %s3103_s17  ;;  %p3106_p3 = scmp.lt.s32.totalorder %s3104_s1, %s3098_s9 }
  0xd9   : > { %2376 = vmatpush1.bf16.msra.mxu0 %v2375_v13  ;;  %v2389_v32 = vpack.c.bf16 %v596_v30, %v594_v29  ;;  %v595_v34 = vld [vmem:[#allocation5 + $0x2b0] sm:$0xff]  ;;  %v598_v35 = vld [vmem:[#allocation5 + $0x2c8] sm:$0xff]  ;;  %v600_v36 = vld [vmem:[#allocation5 + $0x2d8] sm:$0xff]  ;;  %p3101_p13 = pneg %p3100_p12 }
  0xda   : > { %2378 = vmatprep.subr.bf16.mxu0 %v2377_v14  ;;  %v2391_v37 = vpack.c.bf16 %v595_v34, %v593_v33  ;;  %v2393_v38 = vpack.c.bf16 %v600_v36, %v598_v35  ;;  %v597_v39 = vld [vmem:[#allocation5 + $0x2c0] sm:$0xff]  ;;  %v599_v40 = vld [vmem:[#allocation5 + $0x2d0] sm:$0xff]  ;;  %v384_v41 = vld [vmem:[%s3493_s13 + $0x18] sm:$0xff]  ;;  %p3107_p2 = por %p3106_p3, %p3105_p1 }
  0xdb   : > { %v602_v42 = vld [vmem:[#allocation5 + $0x2e8] sm:$0xff]  ;;  %v604_v43 = vld [vmem:[#allocation5 + $0x2f8] sm:$0xff]  ;;  %1002 = vmatprep.mubr.f32.mxu0 %v384_v41  ;;  %v2395_v44 = vpack.c.bf16 %v599_v40, %v597_v39  ;;  %v601_v46 = vld [vmem:[#allocation5 + $0x2e0] sm:$0xff] }
  0xdc   : > { %v2397_v45 = vpack.c.bf16 %v604_v43, %v602_v42  ;;  %v603_v47 = vld [vmem:[#allocation5 + $0x2f0] sm:$0xff]  ;;  %v606_v48 = vld [vmem:[#allocation5 + $0x308] sm:$0xff]  ;;  %v608_v49 = vld [vmem:[#allocation5 + $0x318] sm:$0xff]  ;;  %p3108_p8 = pnand %p3107_p2, %p3101_p13 }
  0xdd   : > { %2380 = vmatpush1.bf16.msra.mxu0 %v2379_v19  ;;  %v2399_v50 = vpack.c.bf16 %v603_v47, %v601_v46  ;;  %v2401_v51 = vpack.c.bf16 %v608_v49, %v606_v48  ;;  %v605_v52 = vld [vmem:[#allocation5 + $0x300] sm:$0xff]  ;;  %v607_v53 = vld [vmem:[#allocation5 + $0x310] sm:$0xff]  ;;  %v610_v54 = vld [vmem:[#allocation5 + $0x328] sm:$0xff] }
  0xde   : > { %2382 = vmatprep.subr.bf16.mxu0 %v2381_v20  ;;  %v612_v55 = vld [vmem:[#allocation5 + $0x338] sm:$0xff]  ;;  %v2403_v56 = vpack.c.bf16 %v607_v53, %v605_v52  ;;  %v609_v58 = vld [vmem:[#allocation5 + $0x320] sm:$0xff]  ;;  %v611_v59 = vld [vmem:[#allocation5 + $0x330] sm:$0xff] }
  0xdf   : > { %v2405_v57 = vpack.c.bf16 %v612_v55, %v610_v54  ;;  %v614_v60 = vld [vmem:[#allocation5 + $0x348] sm:$0xff]  ;;  %v616_v61 = vld [vmem:[#allocation5 + $0x358] sm:$0xff]  ;;  %v2407_v62 = vpack.c.bf16 %v611_v59, %v609_v58  ;;  %v613_v0 = vld [vmem:[#allocation5 + $0x340] sm:$0xff] }
  0xe0   : > { %v2409_v63 = vpack.c.bf16 %v616_v61, %v614_v60  ;;  %v615_v1 = vld [vmem:[#allocation5 + $0x350] sm:$0xff]  ;;  %v618_v2 = vld [vmem:[#allocation5 + $0x368] sm:$0xff]  ;;  %v620_v3 = vld [vmem:[#allocation5 + $0x378] sm:$0xff] }
  0xe1   : > { %2384 = vmatpush1.bf16.msra.mxu0 %v2383_v25  ;;  %v2411_v4 = vpack.c.bf16 %v615_v1, %v613_v0  ;;  %v2413_v5 = vpack.c.bf16 %v620_v3, %v618_v2  ;;  %v617_v6 = vld [vmem:[#allocation5 + $0x360] sm:$0xff]  ;;  %v619_v7 = vld [vmem:[#allocation5 + $0x370] sm:$0xff]  ;;  %v622_v8 = vld [vmem:[#allocation5 + $0x388] sm:$0xff] }
  0xe2   : > { %2386 = vmatprep.subr.bf16.mxu0 %v2385_v26  ;;  %v624_v9 = vld [vmem:[#allocation5 + $0x398] sm:$0xff]  ;;  %v2415_v10 = vpack.c.bf16 %v619_v7, %v617_v6  ;;  %v621_v12 = vld [vmem:[#allocation5 + $0x380] sm:$0xff]  ;;  %v623_v13 = vld [vmem:[#allocation5 + $0x390] sm:$0xff] }
  0xe3   : > { %v2417_v11 = vpack.c.bf16 %v624_v9, %v622_v8  ;;  %v626_v14 = vld [vmem:[#allocation5 + $0x3a8] sm:$0xff]  ;;  %v628_v15 = vld [vmem:[#allocation5 + $0x3b8] sm:$0xff]  ;;  %v2419_v16 = vpack.c.bf16 %v623_v13, %v621_v12  ;;  %v625_v18 = vld [vmem:[#allocation5 + $0x3a0] sm:$0xff] }
  0xe4   : > { %v2421_v17 = vpack.c.bf16 %v628_v15, %v626_v14  ;;  %v627_v19 = vld [vmem:[#allocation5 + $0x3b0] sm:$0xff]  ;;  %v630_v20 = vld [vmem:[#allocation5 + $0x3c8] sm:$0xff]  ;;  %v632_v21 = vld [vmem:[#allocation5 + $0x3d8] sm:$0xff] }
  0xe5   : > { %2388 = vmatpush1.bf16.msra.mxu0 %v2387_v31  ;;  %v2423_v22 = vpack.c.bf16 %v627_v19, %v625_v18  ;;  %v629_v23 = vld [vmem:[#allocation5 + $0x3c0] sm:$0xff]  ;;  %v631_v24 = vld [vmem:[#allocation5 + $0x3d0] sm:$0xff]  ;;  %v2425_v25 = vpack.c.bf16 %v632_v21, %v630_v20  ;;  %v634_v26 = vld [vmem:[#allocation5 + $0x3e8] sm:$0xff] }
  0xe6   : > { %2390 = vmatprep.subr.bf16.mxu0 %v2389_v32  ;;  %v510_v27 = vld [vmem:[#allocation5 + $0x8] sm:$0xff]  ;;  %v512_v28 = vld [vmem:[#allocation5 + $0x18] sm:$0xff]  ;;  %v509_v31 = vld [vmem:[#allocation5] sm:$0xff]  ;;  %v2427_v34 = vpack.c.bf16 %v631_v24, %v629_v23 }
  0xe7   : > { %v636_v29 = vld [vmem:[#allocation5 + $0x3f8] sm:$0xff]  ;;  %v2305_v30 = vpack.c.bf16 %v512_v28, %v510_v27  ;;  %v511_v32 = vld [vmem:[#allocation5 + $0x10] sm:$0xff]  ;;  %v633_v35 = vld [vmem:[#allocation5 + $0x3e0] sm:$0xff] }
  0xe8   : > { %v2307_v33 = vpack.c.bf16 %v511_v32, %v509_v31  ;;  %v635_v36 = vld [vmem:[#allocation5 + $0x3f0] sm:$0xff]  ;;  %v516_v39 = vld [vmem:[#allocation5 + $0x38] sm:$0xff]  ;;  %v513_v40 = vld [vmem:[#allocation5 + $0x20] sm:$0xff] }
  0xe9   : > { %2392 = vmatpush1.bf16.msra.mxu0 %v2391_v37  ;;  %2306 = vmatprep.subr.bf16.mxu1 %v2305_v30  ;;  %v514_v37 = vld [vmem:[#allocation5 + $0x28] sm:$0xff]  ;;  %v515_v41 = vld [vmem:[#allocation5 + $0x30] sm:$0xff]  ;;  %v640_v43 = vld [vmem:[#allocation5 + $0x418] sm:$0xff]  ;;  %v2431_v46 = vpack.c.bf16 %v635_v36, %v633_v35 }
  0xea   : > { %2394 = vmatprep.subr.bf16.mxu0 %v2393_v38  ;;  %v2429_v38 = vpack.c.bf16 %v636_v29, %v634_v26  ;;  %2308 = vmatpush1.bf16.msra.mxu1 %v2307_v33  ;;  %v638_v42 = vld [vmem:[#allocation5 + $0x408] sm:$0xff]  ;;  %v520_v48 = vld [vmem:[#allocation5 + $0x58] sm:$0xff]  ;;  %v517_v49 = vld [vmem:[#allocation5 + $0x40] sm:$0xff] }
  0xeb   : > { %v518_v47 = vld [vmem:[#allocation5 + $0x48] sm:$0xff]  ;;  %v639_v52 = vld [vmem:[#allocation5 + $0x410] sm:$0xff]  ;;  %v524_v59 = vld [vmem:[#allocation5 + $0x78] sm:$0xff] }
  0xec   : > { %v2313_v53 = vpack.c.bf16 %v520_v48, %v518_v47  ;;  %v519_v54 = vld [vmem:[#allocation5 + $0x50] sm:$0xff]  ;;  %v642_v55 = vld [vmem:[#allocation5 + $0x428] sm:$0xff]  ;;  %v392_v1 = vld [vmem:[%s3493_s13 + $0x58] sm:$0xff] }
  0xed   : > { %2396 = vmatpush1.bf16.msra.mxu0 %v2395_v44  ;;  %v2309_v44 = vpack.c.bf16 %v516_v39, %v514_v37  ;;  %v522_v58 = vld [vmem:[#allocation5 + $0x68] sm:$0xff]  ;;  %v383_v60 = vld [vmem:[%s3493_s13 + $0x10] sm:$0xff]  ;;  %v641_v3 = vld [vmem:[#allocation5 + $0x420] sm:$0xff] }
  0xee   : > { %2398 = vmatprep.subr.bf16.mxu0 %v2397_v45  ;;  %v2311_v45 = vpack.c.bf16 %v515_v41, %v513_v40  ;;  %v523_v0 = vld [vmem:[#allocation5 + $0x70] sm:$0xff]  ;;  %v646_v6 = vld [vmem:[#allocation5 + $0x448] sm:$0xff]  ;;  %v648_v7 = vld [vmem:[#allocation5 + $0x458] sm:$0xff] }
  0xef   : > { %2310 = vmatprep.subr.bf16.mxu1 %v2309_v44  ;;  %v526_v8 = vld [vmem:[#allocation5 + $0x88] sm:$0xff]  ;;  %v528_v9 = vld [vmem:[#allocation5 + $0x98] sm:$0xff]  ;;  %v391_v12 = vld [vmem:[%s3493_s13 + $0x50] sm:$0xff] }
  0xf0   : > { %2312 = vmatpush1.bf16.msra.mxu1 %v2311_v45  ;;  %v400_v14 = vld [vmem:[%s3493_s13 + $0x98] sm:$0xff]  ;;  %v645_v15 = vld [vmem:[#allocation5 + $0x440] sm:$0xff]  ;;  %v647_v18 = vld [vmem:[#allocation5 + $0x450] sm:$0xff] }
  0xf1   : > { %2400 = vmatpush1.bf16.msra.mxu0 %v2399_v50  ;;  %v2433_v50 = vpack.c.bf16 %v640_v43, %v638_v42  ;;  %2314 = vmatprep.subr.bf16.mxu1 %v2313_v53  ;;  %v650_v19 = vld [vmem:[#allocation5 + $0x468] sm:$0xff]  ;;  %v652_v20 = vld [vmem:[#allocation5 + $0x478] sm:$0xff]  ;;  %v529_v24 = vld [vmem:[#allocation5 + $0xa0] sm:$0xff]  ;;  %v2443_v28 = vpack.c.bf16 %v647_v18, %v645_v15 }
  0xf2   : > { %2402 = vmatprep.subr.bf16.mxu0 %v2401_v51  ;;  %v637_v51 = vld [vmem:[#allocation5 + $0x400] sm:$0xff]  ;;  %v532_v23 = vld [vmem:[#allocation5 + $0xb8] sm:$0xff]  ;;  %v531_v27 = vld [vmem:[#allocation5 + $0xb0] sm:$0xff]  ;;  %v2445_v32 = vpack.c.bf16 %v652_v20, %v650_v19 }
  0xf3   : > { %v2435_v61 = vpack.c.bf16 %v639_v52, %v637_v51  ;;  %v408_v29 = vld [vmem:[%s3493_s13 + $0xd8] sm:$0xff]  ;;  %v649_v30 = vld [vmem:[#allocation5 + $0x460] sm:$0xff]  ;;  %v651_v31 = vld [vmem:[#allocation5 + $0x470] sm:$0xff] }
  0xf4   : > { %v654_v33 = vld [vmem:[#allocation5 + $0x488] sm:$0xff]  ;;  %v536_v36 = vld [vmem:[#allocation5 + $0xd8] sm:$0xff]  ;;  %v533_v39 = vld [vmem:[#allocation5 + $0xc0] sm:$0xff]  ;;  %v2447_v42 = vpack.c.bf16 %v651_v31, %v649_v30 }
  0xf5   : > { %2404 = vmatpush1.bf16.msra.mxu0 %v2403_v56  ;;  %v644_v56 = vld [vmem:[#allocation5 + $0x438] sm:$0xff]  ;;  %v534_v35 = vld [vmem:[#allocation5 + $0xc8] sm:$0xff]  ;;  %v535_v40 = vld [vmem:[#allocation5 + $0xd0] sm:$0xff] }
  0xf6   : > { %2406 = vmatprep.subr.bf16.mxu0 %v2405_v57  ;;  %v2315_v57 = vpack.c.bf16 %v519_v54, %v517_v49  ;;  %v2437_v2 = vpack.c.bf16 %v644_v56, %v642_v55  ;;  %v656_v37 = vld [vmem:[#allocation5 + $0x498] sm:$0xff]  ;;  %v407_v41 = vld [vmem:[%s3493_s13 + $0xd0] sm:$0xff]  ;;  %v653_v44 = vld [vmem:[#allocation5 + $0x480] sm:$0xff]  ;;  %v2331_v49 = vpack.c.bf16 %v535_v40, %v533_v39 }
  0xf7   : > { %v416_v43 = vld [vmem:[%s3493_s13 + $0x118] sm:$0xff]  ;;  %v538_v45 = vld [vmem:[#allocation5 + $0xe8] sm:$0xff]  ;;  %v655_v47 = vld [vmem:[#allocation5 + $0x490] sm:$0xff] }
  0xf8   : > { %2316 = vmatpush1.bf16.msra.mxu1 %v2315_v57  ;;  %v658_v48 = vld [vmem:[#allocation5 + $0x4a8] sm:$0xff]  ;;  %v660_v51 = vld [vmem:[#allocation5 + $0x4b8] sm:$0xff]  ;;  %v537_v53 = vld [vmem:[#allocation5 + $0xe0] sm:$0xff]  ;;  %v2451_v56 = vpack.c.bf16 %v655_v47, %v653_v44 }
  0xf9   : > { %2408 = vmatpush1.bf16.msra.mxu0 %v2407_v62  ;;  %v2317_v62 = vpack.c.bf16 %v524_v59, %v522_v58  ;;  %v539_v54 = vld [vmem:[#allocation5 + $0xf0] sm:$0xff]  ;;  %v424_v57 = vld [vmem:[%s3493_s13 + $0x158] sm:$0xff]  ;;  %v542_v58 = vld [vmem:[#allocation5 + $0x108] sm:$0xff] }
  0xfa   : > { %2410 = vmatprep.subr.bf16.mxu0 %v2409_v63  ;;  %v521_v63 = vld [vmem:[#allocation5 + $0x60] sm:$0xff]  ;;  %v415_v55 = vld [vmem:[%s3493_s13 + $0x110] sm:$0xff]  ;;  %v544_v59 = vld [vmem:[#allocation5 + $0x118] sm:$0xff] }
  0xfb   : > { %2318 = vmatprep.subr.bf16.mxu1 %v2317_v62  ;;  %v659_v62 = vld [vmem:[#allocation5 + $0x4b0] sm:$0xff]  ;;  %v668_v15 = vld [vmem:[#allocation5 + $0x4f8] sm:$0xff]  ;;  %v550_v19 = vld [vmem:[#allocation5 + $0x148] sm:$0xff] }
  0xfc   : > { %v547_v18 = vld [vmem:[#allocation5 + $0x130] sm:$0xff]  ;;  %v552_v20 = vld [vmem:[#allocation5 + $0x158] sm:$0xff]  ;;  %v549_v31 = vld [vmem:[#allocation5 + $0x140] sm:$0xff] }
  0xfd   : > { %2412 = vmatpush1.bf16.msra.mxu0 %v2411_v4  ;;  %v643_v4 = vld [vmem:[#allocation5 + $0x430] sm:$0xff]  ;;  %v2345_v30 = vpack.c.bf16 %v552_v20, %v550_v19  ;;  %v669_v39 = vld [vmem:[#allocation5 + $0x500] sm:$0xff]  ;;  %v558_v47 = vld [vmem:[#allocation5 + $0x188] sm:$0xff] }
  0xfe   : > { %2414 = vmatprep.subr.bf16.mxu0 %v2413_v5  ;;  %v2319_v5 = vpack.c.bf16 %v523_v0, %v521_v63  ;;  %v2439_v13 = vpack.c.bf16 %v643_v4, %v641_v3  ;;  %v662_v63 = vld [vmem:[#allocation5 + $0x4c8] sm:$0xff]  ;;  %v2335_v0 = vpack.c.bf16 %v539_v54, %v537_v53  ;;  %v541_v3 = vld [vmem:[#allocation5 + $0x100] sm:$0xff]  ;;  %v543_v4 = vld [vmem:[#allocation5 + $0x110] sm:$0xff] }
  0xff   : > { %v671_v40 = vld [vmem:[#allocation5 + $0x510] sm:$0xff]  ;;  %v673_v53 = vld [vmem:[#allocation5 + $0x520] sm:$0xff]  ;;  %v686_v19 = vld [vmem:[#allocation5 + $0x588] sm:$0xff] }
 0x100   : > { %2320 = vmatpush1.bf16.msra.mxu1 %v2319_v5  ;;  %v546_v5 = vld [vmem:[#allocation5 + $0x128] sm:$0xff]  ;;  %v675_v54 = vld [vmem:[#allocation5 + $0x530] sm:$0xff]  ;;  %v688_v20 = vld [vmem:[#allocation5 + $0x598] sm:$0xff] }
 0x101   : > { %2416 = vmatpush1.bf16.msra.mxu0 %v2415_v10  ;;  %v525_v10 = vld [vmem:[#allocation5 + $0x80] sm:$0xff] }
 0x102   : > { %2418 = vmatprep.subr.bf16.mxu0 %v2417_v11  ;;  %v527_v11 = vld [vmem:[#allocation5 + $0x90] sm:$0xff] }
 0x103   : > { %v2323_v21 = vpack.c.bf16 %v527_v11, %v525_v10  ;;  %v661_v11 = vld [vmem:[#allocation5 + $0x4c0] sm:$0xff] }
 0x105   : > { %2420 = vmatpush1.bf16.msra.mxu0 %v2419_v16  ;;  %v2321_v16 = vpack.c.bf16 %v528_v9, %v526_v8  ;;  %v432_v9 = vld [vmem:[%s3493_s13 + $0x198] sm:$0xff] }
 0x106   : > { %2422 = vmatprep.subr.bf16.mxu0 %v2421_v17  ;;  %v2441_v17 = vpack.c.bf16 %v648_v7, %v646_v6  ;;  %v548_v6 = vld [vmem:[#allocation5 + $0x138] sm:$0xff]  ;;  %v423_v7 = vld [vmem:[%s3493_s13 + $0x150] sm:$0xff] }
 0x107   : > { %2322 = vmatprep.subr.bf16.mxu1 %v2321_v16  ;;  %v2341_v16 = vpack.c.bf16 %v548_v6, %v546_v5  ;;  %v682_v5 = vld [vmem:[#allocation5 + $0x568] sm:$0xff] }
 0x108   : > { %2324 = vmatpush1.bf16.msra.mxu1 %v2323_v21  ;;  %v431_v21 = vld [vmem:[%s3493_s13 + $0x190] sm:$0xff] }
 0x109   : > { %2424 = vmatpush1.bf16.msra.mxu0 %v2423_v22  ;;  %v530_v22 = vld [vmem:[#allocation5 + $0xa8] sm:$0xff] }
 0x10a   : > { %2426 = vmatprep.subr.bf16.mxu0 %v2425_v25  ;;  %v399_v25 = vld [vmem:[%s3493_s13 + $0x90] sm:$0xff]  ;;  %v2325_v26 = vpack.c.bf16 %v532_v23, %v530_v22  ;;  %v440_v23 = vld [vmem:[%s3493_s13 + $0x1d8] sm:$0xff] }
 0x10c   : > { %2326 = vmatprep.subr.bf16.mxu1 %v2325_v26  ;;  %v667_v26 = vld [vmem:[#allocation5 + $0x4f0] sm:$0xff] }
 0x10d   : > { %2428 = vmatpush1.bf16.msra.mxu0 %v2427_v34  ;;  %v2327_v34 = vpack.c.bf16 %v531_v27, %v529_v24  ;;  %v670_v27 = vld [vmem:[#allocation5 + $0x508] sm:$0xff] }
 0x10e   : > { %2430 = vmatprep.subr.bf16.mxu0 %v2429_v38  ;;  %v2329_v38 = vpack.c.bf16 %v536_v36, %v534_v35  ;;  %v439_v35 = vld [vmem:[%s3493_s13 + $0x1d0] sm:$0xff] }
 0x10f   : > { %2328 = vmatpush1.bf16.msra.mxu1 %v2327_v34  ;;  %v556_v34 = vld [vmem:[#allocation5 + $0x178] sm:$0xff] }
 0x110   : > { %2330 = vmatprep.subr.bf16.mxu1 %v2329_v38 }
 0x111   : > { %2432 = vmatpush1.bf16.msra.mxu0 %v2431_v46  ;;  %v2449_v46 = vpack.c.bf16 %v656_v37, %v654_v33  ;;  %v554_v33 = vld [vmem:[#allocation5 + $0x168] sm:$0xff]  ;;  %v448_v37 = vld [vmem:[%s3493_s13 + $0x218] sm:$0xff] }
 0x112   : > { %2434 = vmatprep.subr.bf16.mxu0 %v2433_v50  ;;  %v540_v50 = vld [vmem:[#allocation5 + $0xf8] sm:$0xff]  ;;  %v2349_v44 = vpack.c.bf16 %v556_v34, %v554_v33  ;;  %v687_v33 = vld [vmem:[#allocation5 + $0x590] sm:$0xff]  ;;  %v690_v34 = vld [vmem:[#allocation5 + $0x5a8] sm:$0xff] }
 0x113   : > { %v2333_v52 = vpack.c.bf16 %v540_v50, %v538_v45  ;;  %2332 = vmatpush1.bf16.msra.mxu1 %v2331_v49  ;;  %v553_v45 = vld [vmem:[#allocation5 + $0x160] sm:$0xff]  ;;  %v447_v49 = vld [vmem:[%s3493_s13 + $0x210] sm:$0xff]  ;;  %v2467_v50 = vpack.c.bf16 %v671_v40, %v669_v39 }
 0x114   : > { %1003 = vmatmul.mubr.f32.vlgmr.msra.gmra.mrb[0].mxu0 %v383_v60  ;;  %v2453_v60 = vpack.c.bf16 %v660_v51, %v658_v48  ;;  %v560_v48 = vld [vmem:[#allocation5 + $0x198] sm:$0xff]  ;;  %v571_v39 = vld [vmem:[#allocation5 + $0x1f0] sm:$0xff] }
 0x115   : > { %2436 = vmatpush1.bf16.msra.mxu0 %v2435_v61  ;;  %1008 = vmatprep.mubr.f32.mxu0 %v392_v1  ;;  %v657_v61 = vld [vmem:[#allocation5 + $0x4a0] sm:$0xff]  ;;  %v664_v1 = vld [vmem:[#allocation5 + $0x4d8] sm:$0xff]  ;;  %v479_v40 = vld [vmem:[%s3493_s13 + $0x310] sm:$0xff] }
 0x116   : > { %2438 = vmatprep.subr.bf16.mxu0 %v2437_v2  ;;  %2334 = vmatprep.subr.bf16.mxu1 %v2333_v52  ;;  %v2337_v2 = vpack.c.bf16 %v544_v59, %v542_v58  ;;  %v2455_v8 = vpack.c.bf16 %v659_v62, %v657_v61  ;;  %v2457_v10 = vpack.c.bf16 %v664_v1, %v662_v63  ;;  %v456_v51 = vld [vmem:[%s3493_s13 + $0x258] sm:$0xff]  ;;  %v557_v59 = vld [vmem:[#allocation5 + $0x180] sm:$0xff]  ;;  %v562_v61 = vld [vmem:[#allocation5 + $0x1a8] sm:$0xff] }
 0x117   : > { %2336 = vmatpush1.bf16.msra.mxu1 %v2335_v0  ;;  %v2353_v58 = vpack.c.bf16 %v560_v48, %v558_v47  ;;  %v564_v62 = vld [vmem:[#allocation5 + $0x1b8] sm:$0xff]  ;;  %v455_v63 = vld [vmem:[%s3493_s13 + $0x250] sm:$0xff]  ;;  %v2471_v0 = vpack.c.bf16 %v675_v54, %v673_v53  ;;  %v694_v47 = vld [vmem:[#allocation5 + $0x5c8] sm:$0xff] }
 0x118   : > { %1009 = vmatmul.mubr.f32.gmra.mrb[2].mxu0 %v391_v12  ;;  %v663_v12 = vld [vmem:[#allocation5 + $0x4d0] sm:$0xff]  ;;  %2338 = vmatprep.subr.bf16.mxu1 %v2337_v2  ;;  %v464_v1 = vld [vmem:[%s3493_s13 + $0x298] sm:$0xff]  ;;  %v693_v53 = vld [vmem:[#allocation5 + $0x5c0] sm:$0xff] }
 0x119   : > { %2440 = vmatpush1.bf16.msra.mxu0 %v2439_v13  ;;  %1014 = vmatprep.mubr.f32.mxu0 %v400_v14  ;;  %v666_v13 = vld [vmem:[#allocation5 + $0x4e8] sm:$0xff]  ;;  %v2339_v14 = vpack.c.bf16 %v543_v4, %v541_v3  ;;  %v2459_v22 = vpack.c.bf16 %v663_v12, %v661_v11  ;;  %v677_v3 = vld [vmem:[#allocation5 + $0x540] sm:$0xff]  ;;  %v679_v4 = vld [vmem:[#allocation5 + $0x550] sm:$0xff] }
 0x11a   : > { %2442 = vmatprep.subr.bf16.mxu0 %v2441_v17  ;;  %v545_v17 = vld [vmem:[#allocation5 + $0x120] sm:$0xff]  ;;  %v2461_v24 = vpack.c.bf16 %v668_v15, %v666_v13  ;;  %v566_v11 = vld [vmem:[#allocation5 + $0x1c8] sm:$0xff]  ;;  %v568_v12 = vld [vmem:[#allocation5 + $0x1d8] sm:$0xff] }
 0x11b   : > { %2340 = vmatpush1.bf16.msra.mxu1 %v2339_v14  ;;  %v463_v13 = vld [vmem:[%s3493_s13 + $0x290] sm:$0xff]  ;;  %v2475_v14 = vpack.c.bf16 %v679_v4, %v677_v3  ;;  %v472_v15 = vld [vmem:[%s3493_s13 + $0x2d8] sm:$0xff]  ;;  %v389_v3 = vld [vmem:[%s3493_s13 + $0x40] sm:$0xff] }
 0x11c   : > { %1015 = vmatmul.mubr.f32.gmra.mrb[4].mxu0 %v399_v25  ;;  %v665_v25 = vld [vmem:[#allocation5 + $0x4e0] sm:$0xff]  ;;  %2342 = vmatprep.subr.bf16.mxu1 %v2341_v16  ;;  %v696_v48 = vld [vmem:[#allocation5 + $0x5d8] sm:$0xff]  ;;  %v695_v54 = vld [vmem:[#allocation5 + $0x5d0] sm:$0xff] }
 0x11d   : > { %2444 = vmatpush1.bf16.msra.mxu0 %v2443_v28  ;;  %1020 = vmatprep.mubr.f32.mxu0 %v408_v29  ;;  %v2343_v28 = vpack.c.bf16 %v547_v18, %v545_v17  ;;  %v672_v29 = vld [vmem:[#allocation5 + $0x518] sm:$0xff]  ;;  %v2463_v36 = vpack.c.bf16 %v667_v26, %v665_v25  ;;  %v681_v16 = vld [vmem:[#allocation5 + $0x560] sm:$0xff]  ;;  %v683_v18 = vld [vmem:[#allocation5 + $0x570] sm:$0xff] }
 0x11e   : > { %2446 = vmatprep.subr.bf16.mxu0 %v2445_v32  ;;  %v551_v32 = vld [vmem:[#allocation5 + $0x150] sm:$0xff]  ;;  %v2465_v38 = vpack.c.bf16 %v672_v29, %v670_v27  ;;  %v382_v25 = vld [vmem:[%s3493_s13 + $0x8] sm:$0xff]  ;;  %v572_v27 = vld [vmem:[#allocation5 + $0x1f8] sm:$0xff]  ;;  %v2479_v29 = vpack.c.bf16 %v683_v18, %v681_v16 }
 0x11f   : > { %2344 = vmatpush1.bf16.msra.mxu1 %v2343_v28  ;;  %v570_v26 = vld [vmem:[#allocation5 + $0x1e8] sm:$0xff]  ;;  %841 = vmatprep.mubr.f32.mxu1 %v382_v25  ;;  %v471_v28 = vld [vmem:[%s3493_s13 + $0x2d0] sm:$0xff]  ;;  %v705_v16 = vld [vmem:[#allocation5 + $0x620] sm:$0xff] }
 0x120   : > { %1021 = vmatmul.mubr.f32.gmra.mrb[6].mxu0 %v407_v41  ;;  %v674_v41 = vld [vmem:[#allocation5 + $0x528] sm:$0xff]  ;;  %2346 = vmatprep.subr.bf16.mxu1 %v2345_v30  ;;  %v480_v30 = vld [vmem:[%s3493_s13 + $0x318] sm:$0xff] }
 0x121   : > { %2448 = vmatpush1.bf16.msra.mxu0 %v2447_v42  ;;  %1026 = vmatprep.mubr.f32.mxu0 %v416_v43  ;;  %v2347_v42 = vpack.c.bf16 %v551_v32, %v549_v31  ;;  %v676_v43 = vld [vmem:[#allocation5 + $0x538] sm:$0xff]  ;;  %v2481_v31 = vpack.c.bf16 %v688_v20, %v686_v19  ;;  %v685_v32 = vld [vmem:[#allocation5 + $0x580] sm:$0xff]  ;;  %v398_v4 = vld [vmem:[%s3493_s13 + $0x88] sm:$0xff] }
 0x122   : > { %2450 = vmatprep.subr.bf16.mxu0 %v2449_v46  ;;  %v555_v46 = vld [vmem:[#allocation5 + $0x170] sm:$0xff]  ;;  %v2469_v52 = vpack.c.bf16 %v676_v43, %v674_v41  ;;  %v2483_v41 = vpack.c.bf16 %v687_v33, %v685_v32  ;;  %v406_v18 = vld [vmem:[%s3493_s13 + $0xc8] sm:$0xff] }
 0x123   : > { %2348 = vmatpush1.bf16.msra.mxu1 %v2347_v42  ;;  %v488_v42 = vld [vmem:[%s3493_s13 + $0x358] sm:$0xff]  ;;  %v1518_v20 = vld [vmem:[#allocation8 + $0x8] sm:$0xff] }
 0x124   : > { %1027 = vmatmul.mubr.f32.gmra.mrb[8].mxu0 %v415_v55  ;;  %v678_v55 = vld [vmem:[#allocation5 + $0x548] sm:$0xff]  ;;  %2350 = vmatprep.subr.bf16.mxu1 %v2349_v44  ;;  %v689_v44 = vld [vmem:[#allocation5 + $0x5a0] sm:$0xff]  ;;  %v1519_v25 = vld [vmem:[#allocation8 + $0x10] sm:$0xff] }
 0x125   : > { %2452 = vmatpush1.bf16.msra.mxu0 %v2451_v56  ;;  %1032 = vmatprep.mubr.f32.mxu0 %v424_v57  ;;  %v2351_v56 = vpack.c.bf16 %v555_v46, %v553_v45  ;;  %v680_v57 = vld [vmem:[#allocation5 + $0x558] sm:$0xff]  ;;  %v691_v45 = vld [vmem:[#allocation5 + $0x5b0] sm:$0xff]  ;;  %v414_v32 = vld [vmem:[%s3493_s13 + $0x108] sm:$0xff] }
 0x126   : > { %2454 = vmatprep.subr.bf16.mxu0 %v2453_v60  ;;  %v559_v60 = vld [vmem:[#allocation5 + $0x190] sm:$0xff]  ;;  %v2473_v2 = vpack.c.bf16 %v680_v57, %v678_v55  ;;  %v698_v55 = vld [vmem:[#allocation5 + $0x5e8] sm:$0xff]  ;;  %v381_v57 = vld [vmem:[%s3493_s13] sm:$0xff] }
 0x127   : > { %2352 = vmatpush1.bf16.msra.mxu1 %v2351_v56  ;;  %v2355_v6 = vpack.c.bf16 %v559_v60, %v557_v59  ;;  %v700_v56 = vld [vmem:[#allocation5 + $0x5f8] sm:$0xff]  ;;  %v495_v59 = vld [vmem:[%s3493_s13 + $0x390] sm:$0xff]  ;;  %v2491_v60 = vpack.c.bf16 %v695_v54, %v693_v53 }
 0x128   : > { %1033 = vmatmul.mubr.f32.gmra.mrb[10].mxu0 %v423_v7  ;;  %v684_v7 = vld [vmem:[#allocation5 + $0x578] sm:$0xff]  ;;  %2354 = vmatprep.subr.bf16.mxu1 %v2353_v58  ;;  %v390_v58 = vld [vmem:[%s3493_s13 + $0x48] sm:$0xff] }
 0x129   : > { %2456 = vmatpush1.bf16.msra.mxu0 %v2455_v8  ;;  %1038 = vmatprep.mubr.f32.mxu0 %v432_v9  ;;  %v2357_v8 = vpack.c.bf16 %v564_v62, %v562_v61  ;;  %v561_v9 = vld [vmem:[#allocation5 + $0x1a0] sm:$0xff]  ;;  %v2477_v17 = vpack.c.bf16 %v684_v7, %v682_v5  ;;  %v504_v61 = vld [vmem:[%s3493_s13 + $0x3d8] sm:$0xff]  ;;  %v2493_v62 = vpack.c.bf16 %v700_v56, %v698_v55  ;;  %v503_v5 = vld [vmem:[%s3493_s13 + $0x3d0] sm:$0xff] }
 0x12a   : > { %2458 = vmatprep.subr.bf16.mxu0 %v2457_v10  ;;  %v563_v10 = vld [vmem:[#allocation5 + $0x1b0] sm:$0xff]  ;;  %v386_v7 = vld [vmem:[%s3493_s13 + $0x28] sm:$0xff]  ;;  %v1532_v55 = vld [vmem:[#allocation8 + $0x78] sm:$0xff] }
 0x12b   : > { %2356 = vmatpush1.bf16.msra.mxu1 %v2355_v6  ;;  %v1530_v54 = vld [vmem:[#allocation8 + $0x68] sm:$0xff] }
 0x12c   : > { %1039 = vmatmul.mubr.f32.gmra.mrb[12].mxu0 %v431_v21  ;;  %v2359_v21 = vpack.c.bf16 %v563_v10, %v561_v9  ;;  %2358 = vmatprep.subr.bf16.mxu1 %v2357_v8  ;;  %v701_v9 = vld [vmem:[#allocation5 + $0x600] sm:$0xff]  ;;  %v703_v10 = vld [vmem:[#allocation5 + $0x610] sm:$0xff]  ;;  %v410_v56 = vld [vmem:[%s3493_s13 + $0xe8] sm:$0xff] }
 0x12d   : > { %2460 = vmatpush1.bf16.msra.mxu0 %v2459_v22  ;;  %1044 = vmatprep.mubr.f32.mxu0 %v440_v23  ;;  %v2361_v22 = vpack.c.bf16 %v568_v12, %v566_v11  ;;  %v565_v23 = vld [vmem:[#allocation5 + $0x1c0] sm:$0xff]  ;;  %v706_v12 = vld [vmem:[#allocation5 + $0x628] sm:$0xff]  ;;  %v2499_v19 = vpack.c.bf16 %v703_v10, %v701_v9 }
 0x12e   : > { %2462 = vmatprep.subr.bf16.mxu0 %v2461_v24  ;;  %v567_v24 = vld [vmem:[#allocation5 + $0x1d0] sm:$0xff]  ;;  %v385_v11 = vld [vmem:[%s3493_s13 + $0x20] sm:$0xff] }
 0x12f   : > { %2360 = vmatpush1.bf16.msra.mxu1 %v2359_v21  ;;  %v1520_v21 = vld [vmem:[#allocation8 + $0x18] sm:$0xff] }
 0x130   : > { %1045 = vmatmul.mubr.f32.gmra.mrb[14].mxu0 %v439_v35  ;;  %v2363_v35 = vpack.c.bf16 %v567_v24, %v565_v23  ;;  %2362 = vmatprep.subr.bf16.mxu1 %v2361_v22  ;;  %v1517_v22 = vld [vmem:[#allocation8] sm:$0xff]  ;;  %v2561_v24 = vpack.c.bf16 %v1520_v21, %v1518_v20 }
 0x131   : > { %2464 = vmatpush1.bf16.msra.mxu0 %v2463_v36  ;;  %1050 = vmatprep.mubr.f32.mxu0 %v448_v37  ;;  %v692_v36 = vld [vmem:[#allocation5 + $0x5b8] sm:$0xff]  ;;  %v2365_v37 = vpack.c.bf16 %v572_v27, %v570_v26  ;;  %v1522_v26 = vld [vmem:[#allocation8 + $0x28] sm:$0xff]  ;;  %v717_v10 = vld [vmem:[#allocation5 + $0x680] sm:$0xff] }
 0x132   : > { %2466 = vmatprep.subr.bf16.mxu0 %v2465_v38  ;;  %v569_v38 = vld [vmem:[#allocation5 + $0x1e0] sm:$0xff]  ;;  %v2485_v43 = vpack.c.bf16 %v692_v36, %v690_v34 }
 0x133   : > { %2364 = vmatpush1.bf16.msra.mxu1 %v2363_v35  ;;  %v2367_v46 = vpack.c.bf16 %v571_v39, %v569_v38  ;;  %v1524_v27 = vld [vmem:[#allocation8 + $0x38] sm:$0xff]  ;;  %v1521_v34 = vld [vmem:[#allocation8 + $0x20] sm:$0xff]  ;;  %v1523_v35 = vld [vmem:[#allocation8 + $0x30] sm:$0xff] }
 0x134   : > { %1051 = vmatmul.mubr.f32.gmra.mrb[16].mxu0 %v447_v49  ;;  %2366 = vmatprep.subr.bf16.mxu1 %v2365_v37  ;;  %v487_v49 = vld [vmem:[%s3493_s13 + $0x350] sm:$0xff]  ;;  %v2565_v33 = vpack.c.bf16 %v1524_v27, %v1522_v26  ;;  %v393_v36 = vld [vmem:[%s3493_s13 + $0x60] sm:$0xff] }
 0x135   : > { %2468 = vmatpush1.bf16.msra.mxu0 %v2467_v50  ;;  %1056 = vmatprep.mubr.f32.mxu0 %v456_v51  ;;  %v2487_v50 = vpack.c.bf16 %v691_v45, %v689_v44  ;;  %v496_v51 = vld [vmem:[%s3493_s13 + $0x398] sm:$0xff]  ;;  %v1526_v38 = vld [vmem:[#allocation8 + $0x48] sm:$0xff]  ;;  %v417_v20 = vld [vmem:[%s3493_s13 + $0x120] sm:$0xff] }
 0x136   : > { %2470 = vmatprep.subr.bf16.mxu0 %v2469_v52  ;;  %v2489_v52 = vpack.c.bf16 %v696_v48, %v694_v47  ;;  %v1528_v39 = vld [vmem:[#allocation8 + $0x58] sm:$0xff]  ;;  %v714_v44 = vld [vmem:[#allocation5 + $0x668] sm:$0xff]  ;;  %v2567_v47 = vpack.c.bf16 %v1523_v35, %v1521_v34  ;;  %v723_v27 = vld [vmem:[#allocation5 + $0x6b0] sm:$0xff] }
 0x137   : > { %2368 = vmatpush1.bf16.msra.mxu1 %v2367_v46  ;;  %v716_v45 = vld [vmem:[#allocation5 + $0x678] sm:$0xff]  ;;  %v413_v46 = vld [vmem:[%s3493_s13 + $0x100] sm:$0xff]  ;;  %v422_v48 = vld [vmem:[%s3493_s13 + $0x148] sm:$0xff] }
 0x138   : > { %1057 = vmatmul.mubr.f32.gmra.mrb[18].mxu0 %v455_v63  ;;  %v697_v63 = vld [vmem:[#allocation5 + $0x5e0] sm:$0xff]  ;;  %2562 = vmatprep.subr.bf16.mxu1 %v2561_v24  ;;  %v426_v24 = vld [vmem:[%s3493_s13 + $0x168] sm:$0xff]  ;;  %v1539_v35 = vld [vmem:[#allocation8 + $0xb0] sm:$0xff] }
 0x139   : > { %2472 = vmatpush1.bf16.msra.mxu0 %v2471_v0  ;;  %1062 = vmatprep.mubr.f32.mxu0 %v464_v1  ;;  %v699_v0 = vld [vmem:[#allocation5 + $0x5f0] sm:$0xff]  ;;  %v702_v1 = vld [vmem:[#allocation5 + $0x608] sm:$0xff]  ;;  %v721_v26 = vld [vmem:[#allocation5 + $0x6a0] sm:$0xff] }
 0x13a   : > { %2474 = vmatprep.subr.bf16.mxu0 %v2473_v2  ;;  %842 = vmatmul.mubr.f32.vlgmr.msra.gmra.mrb[0].mxu1 %v381_v57  ;;  %v704_v2 = vld [vmem:[#allocation5 + $0x618] sm:$0xff]  ;;  %v2495_v6 = vpack.c.bf16 %v699_v0, %v697_v63  ;;  %v2509_v57 = vpack.c.bf16 %v716_v45, %v714_v44  ;;  %v430_v0 = vld [vmem:[%s3493_s13 + $0x188] sm:$0xff] }
 0x13b   : > { %847 = vmatprep.mubr.f32.mxu1 %v390_v58  ;;  %v2497_v8 = vpack.c.bf16 %v704_v2, %v702_v1  ;;  %v713_v58 = vld [vmem:[#allocation5 + $0x660] sm:$0xff]  ;;  %v2573_v1 = vpack.c.bf16 %v1532_v55, %v1530_v54  ;;  %v730_v44 = vld [vmem:[#allocation5 + $0x6e8] sm:$0xff]  ;;  %v732_v45 = vld [vmem:[#allocation5 + $0x6f8] sm:$0xff] }
 0x13c   : > { %1063 = vmatmul.mubr.f32.gmra.mrb[20].mxu0 %v463_v13  ;;  %v708_v13 = vld [vmem:[#allocation5 + $0x638] sm:$0xff]  ;;  %v1529_v2 = vld [vmem:[#allocation8 + $0x60] sm:$0xff]  ;;  %v1546_v54 = vld [vmem:[#allocation8 + $0xe8] sm:$0xff] }
 0x13d   : > { %2476 = vmatpush1.bf16.msra.mxu0 %v2475_v14  ;;  %1068 = vmatprep.mubr.f32.mxu0 %v472_v15  ;;  %v397_v14 = vld [vmem:[%s3493_s13 + $0x80] sm:$0xff]  ;;  %v394_v15 = vld [vmem:[%s3493_s13 + $0x68] sm:$0xff]  ;;  %v2501_v23 = vpack.c.bf16 %v708_v13, %v706_v12  ;;  %v724_v13 = vld [vmem:[#allocation5 + $0x6b8] sm:$0xff] }
 0x13e   : > { %2478 = vmatprep.subr.bf16.mxu0 %v2477_v17  ;;  %848 = vmatmul.mubr.f32.gmra.mrb[2].mxu1 %v389_v3  ;;  %v707_v17 = vld [vmem:[#allocation5 + $0x630] sm:$0xff]  ;;  %v722_v12 = vld [vmem:[#allocation5 + $0x6a8] sm:$0xff]  ;;  %v1548_v55 = vld [vmem:[#allocation8 + $0xf8] sm:$0xff] }
 0x13f   : > { %853 = vmatprep.mubr.f32.mxu1 %v398_v4  ;;  %v2503_v37 = vpack.c.bf16 %v707_v17, %v705_v16  ;;  %v1531_v3 = vld [vmem:[#allocation8 + $0x70] sm:$0xff]  ;;  %v409_v4 = vld [vmem:[%s3493_s13 + $0xe0] sm:$0xff]  ;;  %v438_v16 = vld [vmem:[%s3493_s13 + $0x1c8] sm:$0xff] }
 0x140   : > { %1069 = vmatmul.mubr.f32.gmra.mrb[22].mxu0 %v471_v28  ;;  %v710_v28 = vld [vmem:[#allocation5 + $0x648] sm:$0xff] }
 0x141   : > { %2480 = vmatpush1.bf16.msra.mxu0 %v2479_v29  ;;  %1074 = vmatprep.mubr.f32.mxu0 %v480_v30  ;;  %v712_v29 = vld [vmem:[#allocation5 + $0x658] sm:$0xff]  ;;  %v405_v30 = vld [vmem:[%s3493_s13 + $0xc0] sm:$0xff] }
 0x142   : > { %2482 = vmatprep.subr.bf16.mxu0 %v2481_v31  ;;  %854 = vmatmul.mubr.f32.gmra.mrb[4].mxu1 %v397_v14  ;;  %v2563_v31 = vpack.c.bf16 %v1519_v25, %v1517_v22  ;;  %v429_v14 = vld [vmem:[%s3493_s13 + $0x180] sm:$0xff]  ;;  %v1538_v22 = vld [vmem:[#allocation8 + $0xa8] sm:$0xff]  ;;  %v2517_v25 = vpack.c.bf16 %v724_v13, %v722_v12  ;;  %v740_v13 = vld [vmem:[#allocation5 + $0x738] sm:$0xff] }
 0x143   : > { %859 = vmatprep.mubr.f32.mxu1 %v406_v18  ;;  %v1533_v18 = vld [vmem:[#allocation8 + $0x80] sm:$0xff] }
 0x144   : > { %1075 = vmatmul.mubr.f32.gmra.mrb[24].mxu0 %v479_v40  ;;  %v402_v40 = vld [vmem:[%s3493_s13 + $0xa8] sm:$0xff]  ;;  %2564 = vmatpush1.bf16.msra.mxu1 %v2563_v31 }
 0x145   : > { %2484 = vmatpush1.bf16.msra.mxu0 %v2483_v41  ;;  %1080 = vmatprep.mubr.f32.mxu0 %v488_v42  ;;  %v2505_v41 = vpack.c.bf16 %v712_v29, %v710_v28  ;;  %v709_v42 = vld [vmem:[#allocation5 + $0x640] sm:$0xff]  ;;  %v726_v28 = vld [vmem:[#allocation5 + $0x6c8] sm:$0xff]  ;;  %v728_v29 = vld [vmem:[#allocation5 + $0x6d8] sm:$0xff] }
 0x146   : > { %2486 = vmatprep.subr.bf16.mxu0 %v2485_v43  ;;  %v711_v43 = vld [vmem:[#allocation5 + $0x650] sm:$0xff]  ;;  %860 = vmatmul.mubr.f32.gmra.mrb[6].mxu1 %v405_v30  ;;  %v437_v30 = vld [vmem:[%s3493_s13 + $0x1c0] sm:$0xff]  ;;  %v738_v12 = vld [vmem:[#allocation5 + $0x728] sm:$0xff] }
 0x147   : > { %865 = vmatprep.mubr.f32.mxu1 %v414_v32  ;;  %2566 = vmatprep.subr.bf16.mxu1 %v2565_v33  ;;  %v2507_v53 = vpack.c.bf16 %v711_v43, %v709_v42  ;;  %v446_v32 = vld [vmem:[%s3493_s13 + $0x208] sm:$0xff]  ;;  %v725_v42 = vld [vmem:[#allocation5 + $0x6c0] sm:$0xff]  ;;  %v727_v43 = vld [vmem:[#allocation5 + $0x6d0] sm:$0xff] }
 0x148   : > { %1081 = vmatmul.mubr.f32.gmra.mrb[26].mxu0 %v487_v49  ;;  %v2569_v49 = vpack.c.bf16 %v1528_v39, %v1526_v38  ;;  %2568 = vmatpush1.bf16.msra.mxu1 %v2567_v47  ;;  %v1537_v34 = vld [vmem:[#allocation8 + $0xa0] sm:$0xff]  ;;  %v1542_v38 = vld [vmem:[#allocation8 + $0xc8] sm:$0xff]  ;;  %v1544_v39 = vld [vmem:[#allocation8 + $0xd8] sm:$0xff] }
 0x149   : > { %2488 = vmatpush1.bf16.msra.mxu0 %v2487_v50  ;;  %1086 = vmatprep.mubr.f32.mxu0 %v496_v51  ;;  %v1525_v50 = vld [vmem:[#allocation8 + $0x40] sm:$0xff]  ;;  %v1527_v51 = vld [vmem:[#allocation8 + $0x50] sm:$0xff]  ;;  %v2583_v47 = vpack.c.bf16 %v1539_v35, %v1537_v34 }
 0x14a   : > { %2490 = vmatprep.subr.bf16.mxu0 %v2489_v52  ;;  %v401_v52 = vld [vmem:[%s3493_s13 + $0xa0] sm:$0xff]  ;;  %866 = vmatmul.mubr.f32.gmra.mrb[8].mxu1 %v413_v46  ;;  %v2571_v63 = vpack.c.bf16 %v1527_v51, %v1525_v50  ;;  %v1543_v51 = vld [vmem:[#allocation8 + $0xd0] sm:$0xff] }
 0x14b   : > { %871 = vmatprep.mubr.f32.mxu1 %v422_v48  ;;  %2570 = vmatprep.subr.bf16.mxu1 %v2569_v49  ;;  %v445_v46 = vld [vmem:[%s3493_s13 + $0x200] sm:$0xff]  ;;  %v454_v48 = vld [vmem:[%s3493_s13 + $0x248] sm:$0xff]  ;;  %v2585_v49 = vpack.c.bf16 %v1544_v39, %v1542_v38  ;;  %v1555_v35 = vld [vmem:[#allocation8 + $0x130] sm:$0xff] }
 0x14c   : > { %1087 = vmatmul.mubr.f32.gmra.mrb[28].mxu0 %v495_v59  ;;  %v715_v59 = vld [vmem:[#allocation5 + $0x670] sm:$0xff]  ;;  %2572 = vmatpush1.bf16.msra.mxu1 %v2571_v63  ;;  %v1541_v50 = vld [vmem:[#allocation8 + $0xc0] sm:$0xff]  ;;  %v1560_v39 = vld [vmem:[#allocation8 + $0x158] sm:$0xff] }
 0x14d   : > { %2492 = vmatpush1.bf16.msra.mxu0 %v2491_v60  ;;  %1092 = vmatprep.mubr.f32.mxu0 %v504_v61  ;;  %v718_v60 = vld [vmem:[#allocation5 + $0x688] sm:$0xff]  ;;  %v720_v61 = vld [vmem:[#allocation5 + $0x698] sm:$0xff]  ;;  %v2587_v63 = vpack.c.bf16 %v1543_v51, %v1541_v50 }
 0x14e   : > { %2494 = vmatprep.subr.bf16.mxu0 %v2493_v62  ;;  %v421_v62 = vld [vmem:[%s3493_s13 + $0x140] sm:$0xff]  ;;  %v2513_v9 = vpack.c.bf16 %v720_v61, %v718_v60  ;;  %2574 = vmatprep.subr.bf16.mxu1 %v2573_v1  ;;  %v734_v60 = vld [vmem:[#allocation5 + $0x708] sm:$0xff]  ;;  %v736_v61 = vld [vmem:[#allocation5 + $0x718] sm:$0xff]  ;;  %v2589_v1 = vpack.c.bf16 %v1548_v55, %v1546_v54 }
 0x14f   : > { %872 = vmatmul.mubr.f32.gmra.mrb[10].mxu1 %v421_v62  ;;  %v453_v62 = vld [vmem:[%s3493_s13 + $0x240] sm:$0xff]  ;;  %v1558_v38 = vld [vmem:[#allocation8 + $0x148] sm:$0xff]  ;;  %v1559_v51 = vld [vmem:[#allocation8 + $0x150] sm:$0xff] }
 0x150   : > { %1093 = vmatmul.mubr.f32.gmra.mrb[30].mxu0 %v503_v5  ;;  %v2511_v5 = vpack.c.bf16 %v715_v59, %v713_v58  ;;  %877 = vmatprep.mubr.f32.mxu1 %v430_v0  ;;  %v729_v58 = vld [vmem:[#allocation5 + $0x6e0] sm:$0xff]  ;;  %v731_v59 = vld [vmem:[#allocation5 + $0x6f0] sm:$0xff]  ;;  %v462_v0 = vld [vmem:[%s3493_s13 + $0x288] sm:$0xff] }
 0x151   : > { %2496 = vmatpush1.bf16.msra.mxu0 %v2495_v6  ;;  %1163 = vmatprep.mubr.f32.mxu0 %v386_v7  ;;  %v1534_v6 = vld [vmem:[#allocation8 + $0x88] sm:$0xff]  ;;  %v1536_v7 = vld [vmem:[#allocation8 + $0x98] sm:$0xff]  ;;  %v1553_v34 = vld [vmem:[#allocation8 + $0x120] sm:$0xff] }
 0x152   : > { %2498 = vmatprep.subr.bf16.mxu0 %v2497_v8  ;;  %v418_v8 = vld [vmem:[%s3493_s13 + $0x128] sm:$0xff]  ;;  %v2577_v17 = vpack.c.bf16 %v1536_v7, %v1534_v6  ;;  %v1552_v7 = vld [vmem:[#allocation8 + $0x118] sm:$0xff] }
 0x153   : > { %878 = vmatmul.mubr.f32.gmra.mrb[12].mxu1 %v429_v14  ;;  %v1550_v6 = vld [vmem:[#allocation8 + $0x108] sm:$0xff]  ;;  %v461_v14 = vld [vmem:[%s3493_s13 + $0x280] sm:$0xff] }
 0x154   : > { %1164 = vmatmul.mubr.f32.vlgmr.msra.gmra.mrb[0].mxu0 %v385_v11  ;;  %v719_v11 = vld [vmem:[#allocation5 + $0x690] sm:$0xff]  ;;  %883 = vmatprep.mubr.f32.mxu1 %v438_v16  ;;  %v470_v16 = vld [vmem:[%s3493_s13 + $0x2c8] sm:$0xff]  ;;  %v1564_v55 = vld [vmem:[#allocation8 + $0x178] sm:$0xff] }
 0x155   : > { %2500 = vmatpush1.bf16.msra.mxu0 %v2499_v19  ;;  %1169 = vmatprep.mubr.f32.mxu0 %v394_v15  ;;  %v2575_v15 = vpack.c.bf16 %v1531_v3, %v1529_v2  ;;  %v1535_v19 = vld [vmem:[#allocation8 + $0x90] sm:$0xff]  ;;  %v2515_v21 = vpack.c.bf16 %v719_v11, %v717_v10  ;;  %v1545_v2 = vld [vmem:[#allocation8 + $0xe0] sm:$0xff]  ;;  %v1562_v54 = vld [vmem:[#allocation8 + $0x168] sm:$0xff] }
 0x156   : > { %2502 = vmatprep.subr.bf16.mxu0 %v2501_v23  ;;  %v1540_v23 = vld [vmem:[#allocation8 + $0xb8] sm:$0xff]  ;;  %v2579_v31 = vpack.c.bf16 %v1535_v19, %v1533_v18  ;;  %v1547_v3 = vld [vmem:[#allocation8 + $0xf0] sm:$0xff]  ;;  %v1549_v18 = vld [vmem:[#allocation8 + $0x100] sm:$0xff] }
 0x157   : > { %2576 = vmatpush1.bf16.msra.mxu1 %v2575_v15  ;;  %v2581_v33 = vpack.c.bf16 %v1540_v23, %v1538_v22  ;;  %v733_v10 = vld [vmem:[#allocation5 + $0x700] sm:$0xff]  ;;  %v735_v11 = vld [vmem:[#allocation5 + $0x710] sm:$0xff]  ;;  %v2591_v15 = vpack.c.bf16 %v1547_v3, %v1545_v2 }
 0x158   : > { %1170 = vmatmul.mubr.f32.gmra.mrb[2].mxu0 %v393_v36  ;;  %2578 = vmatprep.subr.bf16.mxu1 %v2577_v17  ;;  %v425_v36 = vld [vmem:[%s3493_s13 + $0x160] sm:$0xff]  ;;  %v2593_v17 = vpack.c.bf16 %v1552_v7, %v1550_v6  ;;  %v1551_v19 = vld [vmem:[#allocation8 + $0x110] sm:$0xff]  ;;  %v1554_v22 = vld [vmem:[#allocation8 + $0x128] sm:$0xff] }
 0x159   : > { %2504 = vmatpush1.bf16.msra.mxu0 %v2503_v37  ;;  %1175 = vmatprep.mubr.f32.mxu0 %v402_v40  ;;  %v2519_v37 = vpack.c.bf16 %v723_v27, %v721_v26  ;;  %v434_v40 = vld [vmem:[%s3493_s13 + $0x1a8] sm:$0xff]  ;;  %v1556_v23 = vld [vmem:[#allocation8 + $0x138] sm:$0xff]  ;;  %v739_v27 = vld [vmem:[#allocation5 + $0x730] sm:$0xff] }
 0x15a   : > { %2506 = vmatprep.subr.bf16.mxu0 %v2505_v41  ;;  %v2521_v41 = vpack.c.bf16 %v728_v29, %v726_v28  ;;  %884 = vmatmul.mubr.f32.gmra.mrb[14].mxu1 %v437_v30  ;;  %v737_v26 = vld [vmem:[#allocation5 + $0x720] sm:$0xff]  ;;  %v742_v28 = vld [vmem:[#allocation5 + $0x748] sm:$0xff]  ;;  %v744_v29 = vld [vmem:[#allocation5 + $0x758] sm:$0xff] }
 0x15b   : > { %889 = vmatprep.mubr.f32.mxu1 %v446_v32  ;;  %2580 = vmatpush1.bf16.msra.mxu1 %v2579_v31  ;;  %v469_v30 = vld [vmem:[%s3493_s13 + $0x2c0] sm:$0xff]  ;;  %v2595_v31 = vpack.c.bf16 %v1551_v19, %v1549_v18  ;;  %v478_v32 = vld [vmem:[%s3493_s13 + $0x308] sm:$0xff]  ;;  %v1563_v3 = vld [vmem:[#allocation8 + $0x170] sm:$0xff] }
 0x15c   : > { %1176 = vmatmul.mubr.f32.gmra.mrb[4].mxu0 %v401_v52  ;;  %2582 = vmatprep.subr.bf16.mxu1 %v2581_v33  ;;  %v433_v52 = vld [vmem:[%s3493_s13 + $0x1a0] sm:$0xff]  ;;  %v2597_v33 = vpack.c.bf16 %v1556_v23, %v1554_v22  ;;  %v1566_v6 = vld [vmem:[#allocation8 + $0x188] sm:$0xff]  ;;  %v1567_v19 = vld [vmem:[#allocation8 + $0x190] sm:$0xff] }
 0x15d   : > { %2508 = vmatpush1.bf16.msra.mxu0 %v2507_v53  ;;  %1181 = vmatprep.mubr.f32.mxu0 %v410_v56  ;;  %v2523_v53 = vpack.c.bf16 %v727_v43, %v725_v42  ;;  %v442_v56 = vld [vmem:[%s3493_s13 + $0x1e8] sm:$0xff]  ;;  %v741_v42 = vld [vmem:[#allocation5 + $0x740] sm:$0xff]  ;;  %v743_v43 = vld [vmem:[#allocation5 + $0x750] sm:$0xff] }
 0x15e   : > { %2510 = vmatprep.subr.bf16.mxu0 %v2509_v57  ;;  %v2525_v57 = vpack.c.bf16 %v732_v45, %v730_v44  ;;  %890 = vmatmul.mubr.f32.gmra.mrb[16].mxu1 %v445_v46  ;;  %v746_v44 = vld [vmem:[#allocation5 + $0x768] sm:$0xff]  ;;  %v748_v45 = vld [vmem:[#allocation5 + $0x778] sm:$0xff]  ;;  %v477_v46 = vld [vmem:[%s3493_s13 + $0x300] sm:$0xff] }
 0x15f   : > { %895 = vmatprep.mubr.f32.mxu1 %v454_v48  ;;  %2584 = vmatpush1.bf16.msra.mxu1 %v2583_v47  ;;  %v2599_v47 = vpack.c.bf16 %v1555_v35, %v1553_v34  ;;  %v486_v48 = vld [vmem:[%s3493_s13 + $0x348] sm:$0xff]  ;;  %v1568_v7 = vld [vmem:[#allocation8 + $0x198] sm:$0xff]  ;;  %v1571_v34 = vld [vmem:[#allocation8 + $0x1b0] sm:$0xff] }
 0x160   : > { %1182 = vmatmul.mubr.f32.gmra.mrb[6].mxu0 %v409_v4  ;;  %2586 = vmatprep.subr.bf16.mxu1 %v2585_v49  ;;  %v441_v4 = vld [vmem:[%s3493_s13 + $0x1e0] sm:$0xff]  ;;  %v2601_v49 = vpack.c.bf16 %v1560_v39, %v1558_v38  ;;  %v1570_v22 = vld [vmem:[#allocation8 + $0x1a8] sm:$0xff] }
 0x161   : > { %2512 = vmatpush1.bf16.msra.mxu0 %v2511_v5  ;;  %1187 = vmatprep.mubr.f32.mxu0 %v418_v8  ;;  %v2527_v5 = vpack.c.bf16 %v731_v59, %v729_v58  ;;  %v450_v8 = vld [vmem:[%s3493_s13 + $0x228] sm:$0xff]  ;;  %v745_v58 = vld [vmem:[#allocation5 + $0x760] sm:$0xff]  ;;  %v747_v59 = vld [vmem:[#allocation5 + $0x770] sm:$0xff] }
 0x162   : > { %2514 = vmatprep.subr.bf16.mxu0 %v2513_v9  ;;  %v2529_v9 = vpack.c.bf16 %v736_v61, %v734_v60  ;;  %896 = vmatmul.mubr.f32.gmra.mrb[18].mxu1 %v453_v62  ;;  %v1557_v50 = vld [vmem:[#allocation8 + $0x140] sm:$0xff]  ;;  %v752_v61 = vld [vmem:[#allocation5 + $0x798] sm:$0xff] }
 0x163   : > { %901 = vmatprep.mubr.f32.mxu1 %v462_v0  ;;  %2588 = vmatpush1.bf16.msra.mxu1 %v2587_v63  ;;  %v750_v60 = vld [vmem:[#allocation5 + $0x788] sm:$0xff]  ;;  %v485_v62 = vld [vmem:[%s3493_s13 + $0x340] sm:$0xff]  ;;  %v2603_v63 = vpack.c.bf16 %v1559_v51, %v1557_v50 }
 0x164   : > { %1188 = vmatmul.mubr.f32.gmra.mrb[8].mxu0 %v417_v20  ;;  %2590 = vmatprep.subr.bf16.mxu1 %v2589_v1  ;;  %v449_v20 = vld [vmem:[%s3493_s13 + $0x220] sm:$0xff]  ;;  %v494_v0 = vld [vmem:[%s3493_s13 + $0x388] sm:$0xff]  ;;  %v2605_v1 = vpack.c.bf16 %v1564_v55, %v1562_v54  ;;  %v396_v54 = vld [vmem:[%s3493_s13 + $0x78] sm:$0xff] }
 0x165   : > { %2516 = vmatpush1.bf16.msra.mxu0 %v2515_v21  ;;  %1193 = vmatprep.mubr.f32.mxu0 %v426_v24  ;;  %v2531_v21 = vpack.c.bf16 %v735_v11, %v733_v10  ;;  %v458_v24 = vld [vmem:[%s3493_s13 + $0x268] sm:$0xff]  ;;  %v749_v10 = vld [vmem:[#allocation5 + $0x780] sm:$0xff]  ;;  %v751_v11 = vld [vmem:[#allocation5 + $0x790] sm:$0xff] }
 0x166   : > { %2518 = vmatprep.subr.bf16.mxu0 %v2517_v25  ;;  %v2533_v25 = vpack.c.bf16 %v740_v13, %v738_v12  ;;  %902 = vmatmul.mubr.f32.gmra.mrb[20].mxu1 %v461_v14  ;;  %v1561_v2 = vld [vmem:[#allocation8 + $0x160] sm:$0xff]  ;;  %v756_v13 = vld [vmem:[#allocation5 + $0x7b8] sm:$0xff]  ;;  %v395_v55 = vld [vmem:[%s3493_s13 + $0x70] sm:$0xff] }
 0x167   : > { %907 = vmatprep.mubr.f32.mxu1 %v470_v16  ;;  %2592 = vmatpush1.bf16.msra.mxu1 %v2591_v15  ;;  %v754_v12 = vld [vmem:[#allocation5 + $0x7a8] sm:$0xff]  ;;  %v493_v14 = vld [vmem:[%s3493_s13 + $0x380] sm:$0xff]  ;;  %v2607_v15 = vpack.c.bf16 %v1563_v3, %v1561_v2  ;;  %v444_v2 = vld [vmem:[%s3493_s13 + $0x1f8] sm:$0xff] }
 0x168   : > { %1194 = vmatmul.mubr.f32.gmra.mrb[10].mxu0 %v425_v36  ;;  %2594 = vmatprep.subr.bf16.mxu1 %v2593_v17  ;;  %v457_v36 = vld [vmem:[%s3493_s13 + $0x260] sm:$0xff]  ;;  %v502_v16 = vld [vmem:[%s3493_s13 + $0x3c8] sm:$0xff]  ;;  %v2609_v17 = vpack.c.bf16 %v1568_v7, %v1566_v6  ;;  %v443_v3 = vld [vmem:[%s3493_s13 + $0x1f0] sm:$0xff] }
 0x169   : > { %2520 = vmatpush1.bf16.msra.mxu0 %v2519_v37  ;;  %1199 = vmatprep.mubr.f32.mxu0 %v434_v40  ;;  %v2535_v37 = vpack.c.bf16 %v739_v27, %v737_v26  ;;  %v466_v40 = vld [vmem:[%s3493_s13 + $0x2a8] sm:$0xff]  ;;  %v1572_v23 = vld [vmem:[#allocation8 + $0x1b8] sm:$0xff]  ;;  %v755_v27 = vld [vmem:[#allocation5 + $0x7b0] sm:$0xff] }
 0x16a   : > { %2522 = vmatprep.subr.bf16.mxu0 %v2521_v41  ;;  %v2537_v41 = vpack.c.bf16 %v744_v29, %v742_v28  ;;  %908 = vmatmul.mubr.f32.gmra.mrb[22].mxu1 %v469_v30  ;;  %v1565_v18 = vld [vmem:[#allocation8 + $0x180] sm:$0xff]  ;;  %v760_v29 = vld [vmem:[#allocation5 + $0x7d8] sm:$0xff]  ;;  %v459_v7 = vld [vmem:[%s3493_s13 + $0x270] sm:$0xff] }
 0x16b   : > { %913 = vmatprep.mubr.f32.mxu1 %v478_v32  ;;  %2596 = vmatpush1.bf16.msra.mxu1 %v2595_v31  ;;  %v753_v26 = vld [vmem:[#allocation5 + $0x7a0] sm:$0xff]  ;;  %v758_v28 = vld [vmem:[#allocation5 + $0x7c8] sm:$0xff]  ;;  %v2611_v31 = vpack.c.bf16 %v1567_v19, %v1565_v18  ;;  %v2613_v32 = vpack.c.bf16 %v1572_v23, %v1570_v22  ;;  %v460_v6 = vld [vmem:[%s3493_s13 + $0x278] sm:$0xff] }
 0x16c   : > { %1200 = vmatmul.mubr.f32.gmra.mrb[12].mxu0 %v433_v52  ;;  %2598 = vmatprep.subr.bf16.mxu1 %v2597_v33  ;;  %v465_v52 = vld [vmem:[%s3493_s13 + $0x2a0] sm:$0xff]  ;;  %v2553_v38 = vpack.c.bf16 %v760_v29, %v758_v28  ;;  %v508_v18 = vld [vmem:[%s3493_s13 + $0x3f8] sm:$0xff]  ;;  %v507_v19 = vld [vmem:[%s3493_s13 + $0x3f0] sm:$0xff] }
 0x16d   : > { %2524 = vmatpush1.bf16.msra.mxu0 %v2523_v53  ;;  %1205 = vmatprep.mubr.f32.mxu0 %v442_v56  ;;  %v2539_v53 = vpack.c.bf16 %v743_v43, %v741_v42  ;;  %v474_v56 = vld [vmem:[%s3493_s13 + $0x2e8] sm:$0xff]  ;;  %v501_v30 = vld [vmem:[%s3493_s13 + $0x3c0] sm:$0xff]  ;;  %v764_v42 = vld [vmem:[#allocation5 + $0x7f8] sm:$0xff] }
 0x16e   : > { %2526 = vmatprep.subr.bf16.mxu0 %v2525_v57  ;;  %v2541_v57 = vpack.c.bf16 %v748_v45, %v746_v44  ;;  %914 = vmatmul.mubr.f32.gmra.mrb[24].mxu1 %v477_v46  ;;  %v1569_v33 = vld [vmem:[#allocation8 + $0x1a0] sm:$0xff] }
 0x16f   : > { %919 = vmatprep.mubr.f32.mxu1 %v486_v48  ;;  %2600 = vmatpush1.bf16.msra.mxu1 %v2599_v47  ;;  %v489_v35 = vld [vmem:[%s3493_s13 + $0x360] sm:$0xff]  ;;  %v2615_v43 = vpack.c.bf16 %v1571_v34, %v1569_v33  ;;  %v506_v46 = vld [vmem:[%s3493_s13 + $0x3e8] sm:$0xff] }
 0x170   : > { %1206 = vmatmul.mubr.f32.gmra.mrb[14].mxu0 %v441_v4  ;;  %2602 = vmatprep.subr.bf16.mxu1 %v2601_v49  ;;  %v473_v4 = vld [vmem:[%s3493_s13 + $0x2e0] sm:$0xff]  ;;  %v763_v49 = vld [vmem:[#allocation5 + $0x7f0] sm:$0xff] }
 0x171   : > { %2528 = vmatpush1.bf16.msra.mxu0 %v2527_v5  ;;  %1211 = vmatprep.mubr.f32.mxu0 %v450_v8  ;;  %v2543_v5 = vpack.c.bf16 %v747_v59, %v745_v58  ;;  %v482_v8 = vld [vmem:[%s3493_s13 + $0x328] sm:$0xff]  ;;  %v757_v39 = vld [vmem:[#allocation5 + $0x7c0] sm:$0xff]  ;;  %v412_v58 = vld [vmem:[%s3493_s13 + $0xf8] sm:$0xff] }
 0x172   : > { %2530 = vmatprep.subr.bf16.mxu0 %v2529_v9  ;;  %v2545_v9 = vpack.c.bf16 %v752_v61, %v750_v60  ;;  %920 = vmatmul.mubr.f32.gmra.mrb[26].mxu1 %v485_v62  ;;  %v497_v44 = vld [vmem:[%s3493_s13 + $0x3a0] sm:$0xff]  ;;  %v411_v59 = vld [vmem:[%s3493_s13 + $0xf0] sm:$0xff]  ;;  %v420_v60 = vld [vmem:[%s3493_s13 + $0x138] sm:$0xff] }
 0x173   : > { %925 = vmatprep.mubr.f32.mxu1 %v494_v0  ;;  %2604 = vmatpush1.bf16.msra.mxu1 %v2603_v63  ;;  %v761_v48 = vld [vmem:[#allocation5 + $0x7e0] sm:$0xff]  ;;  %v419_v61 = vld [vmem:[%s3493_s13 + $0x130] sm:$0xff]  ;;  %v428_v62 = vld [vmem:[%s3493_s13 + $0x178] sm:$0xff] }
 0x174   : > { %1212 = vmatmul.mubr.f32.gmra.mrb[16].mxu0 %v449_v20  ;;  %2606 = vmatprep.subr.bf16.mxu1 %v2605_v1  ;;  %v481_v20 = vld [vmem:[%s3493_s13 + $0x320] sm:$0xff]  ;;  %v2559_v51 = vpack.c.bf16 %v763_v49, %v761_v48  ;;  %v427_v63 = vld [vmem:[%s3493_s13 + $0x170] sm:$0xff]  ;;  %v436_v0 = vld [vmem:[%s3493_s13 + $0x1b8] sm:$0xff] }
 0x175   : > { %2532 = vmatpush1.bf16.msra.mxu0 %v2531_v21  ;;  %1217 = vmatprep.mubr.f32.mxu0 %v458_v24  ;;  %v2547_v21 = vpack.c.bf16 %v751_v11, %v749_v10  ;;  %v490_v24 = vld [vmem:[%s3493_s13 + $0x368] sm:$0xff]  ;;  %v505_v50 = vld [vmem:[%s3493_s13 + $0x3e0] sm:$0xff]  ;;  %v435_v1 = vld [vmem:[%s3493_s13 + $0x1b0] sm:$0xff] }
 0x176   : > { %2534 = vmatprep.subr.bf16.mxu0 %v2533_v25  ;;  %v2549_v25 = vpack.c.bf16 %v756_v13, %v754_v12  ;;  %926 = vmatmul.mubr.f32.gmra.mrb[28].mxu1 %v493_v14  ;;  %v476_v10 = vld [vmem:[%s3493_s13 + $0x2f8] sm:$0xff]  ;;  %v475_v11 = vld [vmem:[%s3493_s13 + $0x2f0] sm:$0xff]  ;;  %v1573_v23 = vld [vmem:[#allocation8 + $0x1c0] sm:$0xff] }
 0x177   : > { %931 = vmatprep.mubr.f32.mxu1 %v502_v16  ;;  %2608 = vmatpush1.bf16.msra.mxu1 %v2607_v15  ;;  %v484_v12 = vld [vmem:[%s3493_s13 + $0x338] sm:$0xff]  ;;  %v483_v13 = vld [vmem:[%s3493_s13 + $0x330] sm:$0xff]  ;;  %v1577_v29 = vld [vmem:[#allocation8 + $0x1e0] sm:$0xff] }
 0x178   : > { %1218 = vmatmul.mubr.f32.gmra.mrb[18].mxu0 %v457_v36  ;;  %2610 = vmatprep.subr.bf16.mxu1 %v2609_v17  ;;  %v2551_v36 = vpack.c.bf16 %v755_v27, %v753_v26  ;;  %v492_v14 = vld [vmem:[%s3493_s13 + $0x378] sm:$0xff]  ;;  %v491_v15 = vld [vmem:[%s3493_s13 + $0x370] sm:$0xff] }
 0x179   : > { %2536 = vmatpush1.bf16.msra.mxu0 %v2535_v37  ;;  %1223 = vmatprep.mubr.f32.mxu0 %v466_v40  ;;  %v498_v37 = vld [vmem:[%s3493_s13 + $0x3a8] sm:$0xff]  ;;  %v759_v40 = vld [vmem:[#allocation5 + $0x7d0] sm:$0xff]  ;;  %v500_v16 = vld [vmem:[%s3493_s13 + $0x3b8] sm:$0xff] }
 0x17a   : > { %2538 = vmatprep.subr.bf16.mxu0 %v2537_v41  ;;  %932 = vmatmul.mubr.f32.gmra.mrb[30].mxu1 %v501_v30  ;;  %v762_v41 = vld [vmem:[#allocation5 + $0x7e8] sm:$0xff]  ;;  %v2555_v45 = vpack.c.bf16 %v759_v40, %v757_v39  ;;  %v499_v17 = vld [vmem:[%s3493_s13 + $0x3b0] sm:$0xff]  ;;  %v1580_v27 = vld [vmem:[#allocation8 + $0x1f8] sm:$0xff] }
 0x17b   : > { %2612 = vmatpush1.bf16.msra.mxu1 %v2611_v31  ;;  %v2557_v47 = vpack.c.bf16 %v764_v42, %v762_v41  ;;  %v1578_v26 = vld [vmem:[#allocation8 + $0x1e8] sm:$0xff]  ;;  %v1579_v30 = vld [vmem:[#allocation8 + $0x1f0] sm:$0xff] }
 0x17c   : > { %1224 = vmatmul.mubr.f32.gmra.mrb[20].mxu0 %v465_v52  ;;  %2614 = vmatprep.subr.bf16.mxu1 %v2613_v32  ;;  %v388_v52 = vld [vmem:[%s3493_s13 + $0x38] sm:$0xff]  ;;  %v2621_v28 = vpack.c.bf16 %v1580_v27, %v1578_v26  ;;  %v2623_v31 = vpack.c.bf16 %v1579_v30, %v1577_v29  ;;  %v1866_v40 = vld [vmem:[#allocation11 + $0x80] sm:$0xff]  ;;  %v1867_v41 = vld [vmem:[#allocation11 + $0x88] sm:$0xff] }
 0x17d   : > { %2540 = vmatpush1.bf16.msra.mxu0 %v2539_v53  ;;  %1229 = vmatprep.mubr.f32.mxu0 %v474_v56  ;;  %v387_v53 = vld [vmem:[%s3493_s13 + $0x30] sm:$0xff]  ;;  %v404_v56 = vld [vmem:[%s3493_s13 + $0xb8] sm:$0xff]  ;;  %v2625_v42 = vpack.c.bf16 %v1867_v41, %v1866_v40  ;;  %v1870_v41 = vld [vmem:[#allocation11 + $0xa0] sm:$0xff] }
 0x17e   : > { %2542 = vmatprep.subr.bf16.mxu0 %v2541_v57  ;;  %v403_v57 = vld [vmem:[%s3493_s13 + $0xb0] sm:$0xff] }
 0x17f   : > { %2616 = vmatpush1.bf16.msra.mxu1 %v2615_v43 }
 0x180   : > { %1230 = vmatmul.mubr.f32.gmra.mrb[22].mxu0 %v473_v4  ;;  %v452_v4 = vld [vmem:[%s3493_s13 + $0x238] sm:$0xff] }
 0x181   : > { %2544 = vmatpush1.bf16.msra.mxu0 %v2543_v5  ;;  %1235 = vmatprep.mubr.f32.mxu0 %v482_v8  ;;  %v451_v5 = vld [vmem:[%s3493_s13 + $0x230] sm:$0xff]  ;;  %v468_v8 = vld [vmem:[%s3493_s13 + $0x2b8] sm:$0xff] }
 0x182   : > { %2546 = vmatprep.subr.bf16.mxu0 %v2545_v9  ;;  %v467_v9 = vld [vmem:[%s3493_s13 + $0x2b0] sm:$0xff] }
 0x184   : > { %1236 = vmatmul.mubr.f32.gmra.mrb[24].mxu0 %v481_v20  ;;  %v1574_v20 = vld [vmem:[#allocation8 + $0x1c8] sm:$0xff] }
 0x185   : > { %2548 = vmatpush1.bf16.msra.mxu0 %v2547_v21  ;;  %1241 = vmatprep.mubr.f32.mxu0 %v490_v24  ;;  %v1576_v21 = vld [vmem:[#allocation8 + $0x1d8] sm:$0xff]  ;;  %v1575_v24 = vld [vmem:[#allocation8 + $0x1d0] sm:$0xff] }
 0x186   : > { %2550 = vmatprep.subr.bf16.mxu0 %v2549_v25  ;;  %v2617_v22 = vpack.c.bf16 %v1576_v21, %v1574_v20  ;;  %v2619_v25 = vpack.c.bf16 %v1575_v24, %v1573_v23  ;;  %v1868_v21 = vld [vmem:[#allocation11 + $0x90] sm:$0xff] }
 0x188   : > { %1242 = vmatmul.mubr.f32.gmra.mrb[26].mxu0 %v489_v35  ;;  %2618 = vmatprep.subr.bf16.mxu1 %v2617_v22  ;;  %v1869_v22 = vld [vmem:[#allocation11 + $0x98] sm:$0xff] }
 0x189   : > { %2552 = vmatpush1.bf16.msra.mxu0 %v2551_v36  ;;  %1247 = vmatprep.mubr.f32.mxu0 %v498_v37 }
 0x18a   : > { %2554 = vmatprep.subr.bf16.mxu0 %v2553_v38  ;;  %2620 = vmatpush1.bf16.msra.mxu1 %v2619_v25 }
 0x18b   : > { %2622 = vmatprep.subr.bf16.mxu1 %v2621_v28 }
 0x18c   : > { %1248 = vmatmul.mubr.f32.gmra.mrb[28].mxu0 %v497_v44 }
 0x18d   : > { %2556 = vmatpush1.bf16.msra.mxu0 %v2555_v45  ;;  %1253 = vmatprep.mubr.f32.mxu0 %v506_v46 }
 0x18e   : > { %2558 = vmatprep.subr.bf16.mxu0 %v2557_v47  ;;  %2624 = vmatpush1.bf16.msra.mxu1 %v2623_v31 }
 0x18f   : > { %2626 = vmatprep.subr.bf16.mxu1 %v2625_v42  ;;  %v1871_v42 = vld [vmem:[#allocation11 + $0xa8] sm:$0xff] }
 0x190   : > { %1254 = vmatmul.mubr.f32.gmra.mrb[30].mxu0 %v505_v50 }
 0x191   : > { %2560 = vmatpush1.bf16.msra.mxu0 %v2559_v51  ;;  %1324 = vmatprep.mubr.f32.mxu0 %v388_v52 }
 0x194   : > { %1325 = vmatmul.mubr.f32.vlgmr.msra.gmra.mrb[0].mxu0 %v387_v53 }
 0x195   : > { %1330 = vmatprep.mubr.f32.mxu0 %v396_v54 }
 0x198   : > { %1331 = vmatmul.mubr.f32.gmra.mrb[2].mxu0 %v395_v55 }
 0x199   : > { %1336 = vmatprep.mubr.f32.mxu0 %v404_v56 }
 0x19c   : > { %1337 = vmatmul.mubr.f32.gmra.mrb[4].mxu0 %v403_v57 }
 0x19d   : > { %1342 = vmatprep.mubr.f32.mxu0 %v412_v58 }
 0x1a0   : > { %1343 = vmatmul.mubr.f32.gmra.mrb[6].mxu0 %v411_v59 }
 0x1a1   : > { %1348 = vmatprep.mubr.f32.mxu0 %v420_v60 }
 0x1a4   : > { %1349 = vmatmul.mubr.f32.gmra.mrb[8].mxu0 %v419_v61 }
 0x1a5   : > { %1354 = vmatprep.mubr.f32.mxu0 %v428_v62 }
 0x1a8   : > { %1355 = vmatmul.mubr.f32.gmra.mrb[10].mxu0 %v427_v63  ;;  %v767_v63 = vlaneseq }
 0x1a9   : > { %1360 = vmatprep.mubr.f32.mxu0 %v436_v0 }
 0x1ac   : > { %1361 = vmatmul.mubr.f32.gmra.mrb[12].mxu0 %v435_v1 }
 0x1ad   : > { %1366 = vmatprep.mubr.f32.mxu0 %v444_v2  ;;  %v3687_v2 = vshrl.u32 %v767_v63, 7 }
 0x1b0   : > { %1367 = vmatmul.mubr.f32.gmra.mrb[14].mxu0 %v443_v3 }
 0x1b1   : > { %1372 = vmatprep.mubr.f32.mxu0 %v452_v4 }
 0x1b4   : > { %1373 = vmatmul.mubr.f32.gmra.mrb[16].mxu0 %v451_v5  ;;  %v769_v5 = vsub.s32 0, %v3687_v2 }
 0x1b5   : > { %1378 = vmatprep.mubr.f32.mxu0 %v460_v6  ;;  %v765_v6 = vld [vmem:[#allocation7] sm:$0x3] }
 0x1b8   : > { %1379 = vmatmul.mubr.f32.gmra.mrb[18].mxu0 %v459_v7  ;;  %v773_v7 = vsub.s32 1, %v3687_v2 }
 0x1b9   : > { %1384 = vmatprep.mubr.f32.mxu0 %v468_v8  ;;  %v3697_v8 = vrot.slane %v765_v6, %v769_v5 }
 0x1bc   : > { %1385 = vmatmul.mubr.f32.gmra.mrb[20].mxu0 %v467_v9  ;;  %v3701_v9 = vrot.slane %v765_v6, %v773_v7 }
 0x1bd   : > { %1390 = vmatprep.mubr.f32.mxu0 %v476_v10 }
 0x1c0   : > { %1391 = vmatmul.mubr.f32.gmra.mrb[22].mxu0 %v475_v11 }
 0x1c1   : > { %1396 = vmatprep.mubr.f32.mxu0 %v484_v12 }
 0x1c4   : > { %1397 = vmatmul.mubr.f32.gmra.mrb[24].mxu0 %v483_v13 }
 0x1c5   : > { %1402 = vmatprep.mubr.f32.mxu0 %v492_v14 }
 0x1c8   : > { %1403 = vmatmul.mubr.f32.gmra.mrb[26].mxu0 %v491_v15 }
 0x1c9   : > { %1408 = vmatprep.mubr.f32.mxu0 %v500_v16 }
 0x1cc   : > { %1409 = vmatmul.mubr.f32.gmra.mrb[28].mxu0 %v499_v17 }
 0x1cd   : > { %1414 = vmatprep.mubr.f32.mxu0 %v508_v18  ;;  %v1850_v18 = vld [vmem:[#allocation11] sm:$0xff] }
 0x1d0   : > { %1415 = vmatmul.mubr.f32.gmra.mrb[30].mxu0 %v507_v19  ;;  %v1851_v19 = vld [vmem:[#allocation11 + $0x8] sm:$0xff] }
 0x1d1   : > { %v2627_v28 = vpack.c.bf16 %v1851_v19, %v1850_v18 }
 0x20d   : > { %v843_v32 = vpop.f32.mrb[0].mxu1 }
 0x20e   : > { %v845_v33 = vpop.f32.mrb[1].mxu1  ;;  %v844_v10 = vadd.f32 %v843_v32, %v3697_v8  ;;  %v2629_v32 = vpack.c.bf16 %v1869_v22, %v1868_v21  ;;  %v1873_v21 = vld [vmem:[#allocation11 + $0xb8] sm:$0xff] }
 0x20f   : > { %v846_v11 = vadd.f32 %v845_v33, %v3701_v9  ;;  %v1852_v33 = vld [vmem:[#allocation11 + $0x10] sm:$0xff] }
 0x211   : > { %v849_v34 = vpop.f32.mrb[2].mxu1 }
 0x212   : > { %v851_v35 = vpop.f32.mrb[3].mxu1  ;;  %v850_v15 = vadd.f32 %v849_v34, %v3697_v8  ;;  %v1853_v34 = vld [vmem:[#allocation11 + $0x18] sm:$0xff] }
 0x213   : > { %v852_v17 = vadd.f32 %v851_v35, %v3701_v9 }
 0x215   : > { %v855_v36 = vpop.f32.mrb[4].mxu1 }
 0x216   : > { %v857_v37 = vpop.f32.mrb[5].mxu1  ;;  %v856_v27 = vadd.f32 %v855_v36, %v3697_v8 }
 0x217   : > { %v858_v30 = vadd.f32 %v857_v37, %v3701_v9  ;;  %v2631_v37 = vpack.c.bf16 %v1853_v34, %v1852_v33  ;;  %v1874_v34 = vld [vmem:[#allocation11 + $0xc0] sm:$0xff] }
 0x219   : > { %v3639_v38 = vpop.f32.mrb[6].mxu1 }
 0x21a   : > { %v3641_v39 = vpop.f32.mrb[7].mxu1 }
 0x21d   : > { %v3643_v43 = vpop.f32.mrb[8].mxu1 }
 0x21e   : > { %v3645_v44 = vpop.f32.mrb[9].mxu1 }
 0x222   : > { %v3647_v45 = vpop.f32.mrb[10].mxu1 }
 0x223   : > { %v3649_v46 = vpop.f32.mrb[11].mxu1 }
 0x226   : > { %v3651_v47 = vpop.f32.mrb[12].mxu1 }
 0x227   : > { %v3653_v48 = vpop.f32.mrb[13].mxu1 }
 0x22d   : > { %v3655_v49 = vpop.f32.mrb[14].mxu1 }
 0x22e   : > { %v3657_v50 = vpop.f32.mrb[15].mxu1 }
 0x231   : > { %v3659_v51 = vpop.f32.mrb[16].mxu1 }
 0x232   : > { %v3661_v52 = vpop.f32.mrb[17].mxu1 }
 0x235   : > { %v3663_v53 = vpop.f32.mrb[18].mxu1 }
 0x236   : > { %v3665_v54 = vpop.f32.mrb[19].mxu1 }
 0x239   : > { %v3667_v55 = vpop.f32.mrb[20].mxu1 }
 0x23a   : > { %v3669_v56 = vpop.f32.mrb[21].mxu1 }
 0x23d   : > { %v3671_v57 = vpop.f32.mrb[22].mxu1 }
 0x23e   : > { %v3673_v58 = vpop.f32.mrb[23].mxu1 }
 0x241   : > { %v3675_v59 = vpop.f32.mrb[24].mxu1 }
 0x242   : > { %v3677_v60 = vpop.f32.mrb[25].mxu1 }
 0x245   : > { %v3679_v61 = vpop.f32.mrb[26].mxu1 }
 0x246   : > { %v3681_v62 = vpop.f32.mrb[27].mxu1 }
 0x249   : > { %v3683_v0 = vpop.f32.mrb[28].mxu1 }
 0x24a   : > { %v3685_v1 = vpop.f32.mrb[29].mxu1 }
 0x24d   : > { %v3689_v3 = vpop.f32.mrb[30].mxu1 }
 0x24e   : > { %v3691_v4 = vpop.f32.mrb[31].mxu1 }
 0x267   : > { %v1326_v12 = vpop.f32.mrb[0].mxu0 }
 0x268   : > { %v2658_v13 = vadd.f32 %v1326_v12, %v844_v10  ;;  %v1328_v14 = vpop.f32.mrb[1].mxu0 }
 0x269   : > { %v2660_v16 = vadd.f32 %v1328_v14, %v846_v11  ;;  %v862_v11 = vadd.f32 %v3639_v38, %v3697_v8 }
 0x26a   : > { %v1453_v20 = vmul.f32 0.01, %v2658_v13  ;;  %vm1421_vm0 = vcmp.gt.f32.partialorder %v2658_v13, 0.0 }
 0x26b   : > { %v1454_v23 = vmul.f32 0.01, %v2660_v16  ;;  %v1332_v24 = vpop.f32.mrb[2].mxu0  ;;  %vm1422_vm1 = vcmp.gt.f32.partialorder %v2660_v16, 0.0 }
 0x26c   : > { %v2662_v25 = vadd.f32 %v1332_v24, %v850_v15  ;;  %v1334_v26 = vpop.f32.mrb[3].mxu0  ;;  %v1485_v35 = vsel %vm1421_vm0, %v2658_v13, %v1453_v20  ;;  %v864_v13 = vadd.f32 %v3641_v39, %v3701_v9  ;;  %v2633_v15 = vpack.c.bf16 %v1871_v42, %v1870_v41  ;;  %v1872_v20 = vld [vmem:[#allocation11 + $0xb0] sm:$0xff] }
 0x26d   : > { %v2664_v29 = vadd.f32 %v1334_v26, %v852_v17  ;;  %v1486_v31 = vsel %vm1422_vm1, %v2660_v16, %v1454_v23  ;;  %v1854_v16 = vld [vmem:[#allocation11 + $0x20] sm:$0xff]  ;;  %v1855_v17 = vld [vmem:[#allocation11 + $0x28] sm:$0xff]  ;;  %v868_v39 = vadd.f32 %v3643_v43, %v3697_v8 }
 0x26e   : > { %v1455_v40 = vmul.f32 0.01, %v2662_v25  ;;  %1657 = vmatprep.mubr.f32.mxu1 %v1486_v31  ;;  %vm1423_vm3 = vcmp.gt.f32.partialorder %v2662_v25, 0.0  ;;  %v2635_v26 = vpack.c.bf16 %v1855_v17, %v1854_v16  ;;  %v1857_v31 = vld [vmem:[#allocation11 + $0x38] sm:$0xff] }
 0x26f   : > { %v1456_v63 = vmul.f32 0.01, %v2664_v29  ;;  %v1338_v6 = vpop.f32.mrb[4].mxu0  ;;  %1658 = vmatmul.mubr.f32.vlgmr.msra.gmra.mrb[32].mxu1 %v1485_v35  ;;  %vm1424_vm2 = vcmp.gt.f32.partialorder %v2664_v29, 0.0  ;;  %v1875_v35 = vld [vmem:[#allocation11 + $0xc8] sm:$0xff]  ;;  %v1877_v16 = vld [vmem:[#allocation11 + $0xd8] sm:$0xff] }
 0x270   : > { %v2666_v10 = vadd.f32 %v1338_v6, %v856_v27  ;;  %v1340_v36 = vpop.f32.mrb[5].mxu0  ;;  %2628 = vmatpush3.bf16.msra.mxu1 %v2627_v28  ;;  %v1487_v19 = vsel %vm1423_vm3, %v2662_v25, %v1455_v40  ;;  %v870_v28 = vadd.f32 %v3645_v44, %v3701_v9  ;;  %v2637_v25 = vpack.c.bf16 %v1873_v21, %v1872_v20 }
 0x271   : > { %v2668_v12 = vadd.f32 %v1340_v36, %v858_v30  ;;  %v1488_v14 = vsel %vm1424_vm2, %v2664_v29, %v1456_v63  ;;  %2630 = vmatprep.subr.bf16.mxu1 %v2629_v32  ;;  %v1856_v30 = vld [vmem:[#allocation11 + $0x30] sm:$0xff]  ;;  %v874_v44 = vadd.f32 %v3647_v45, %v3697_v8  ;;  %v876_v36 = vadd.f32 %v3649_v46, %v3701_v9 }
 0x272   : > { %v1457_v18 = vmul.f32 0.01, %v2666_v10  ;;  %1663 = vmatprep.mubr.f32.mxu1 %v1488_v14  ;;  %vm1425_vm5 = vcmp.gt.f32.partialorder %v2666_v10, 0.0  ;;  %v2639_v63 = vpack.c.bf16 %v1857_v31, %v1856_v30  ;;  %v880_v46 = vadd.f32 %v3651_v47, %v3697_v8 }
 0x273   : > { %v1458_v22 = vmul.f32 0.01, %v2668_v12  ;;  %v1344_v23 = vpop.f32.mrb[6].mxu0  ;;  %1664 = vmatmul.mubr.f32.gmra.mrb[34].mxu1 %v1487_v19  ;;  %vm1426_vm4 = vcmp.gt.f32.partialorder %v2668_v12, 0.0 }
 0x274   : > { %v2670_v38 = vadd.f32 %v1344_v23, %v862_v11  ;;  %v1346_v24 = vpop.f32.mrb[7].mxu0  ;;  %2632 = vmatpush3.bf16.msra.mxu1 %v2631_v37  ;;  %v1489_v33 = vsel %vm1425_vm5, %v2666_v10, %v1457_v18  ;;  %v2641_v10 = vpack.c.bf16 %v1875_v35, %v1874_v34  ;;  %v1858_v37 = vld [vmem:[#allocation11 + $0x40] sm:$0xff]  ;;  %v888_v34 = vadd.f32 %v3657_v50, %v3701_v9 }
 0x275   : > { %v2672_v27 = vadd.f32 %v1346_v24, %v864_v13  ;;  %v1490_v29 = vsel %vm1426_vm4, %v2668_v12, %v1458_v22  ;;  %2634 = vmatprep.subr.bf16.mxu1 %v2633_v15  ;;  %v1859_v12 = vld [vmem:[#allocation11 + $0x48] sm:$0xff]  ;;  %v1876_v15 = vld [vmem:[#allocation11 + $0xd0] sm:$0xff]  ;;  %v882_v22 = vadd.f32 %v3653_v48, %v3701_v9  ;;  %v886_v48 = vadd.f32 %v3655_v49, %v3697_v8 }
 0x276   : > { %v1459_v32 = vmul.f32 0.01, %v2670_v38  ;;  %1669 = vmatprep.mubr.f32.mxu1 %v1490_v29  ;;  %vm1427_vm7 = vcmp.gt.f32.partialorder %v2670_v38, 0.0  ;;  %v2643_v20 = vpack.c.bf16 %v1859_v12, %v1858_v37  ;;  %v1860_v24 = vld [vmem:[#allocation11 + $0x50] sm:$0xff]  ;;  %v1879_v29 = vld [vmem:[#allocation11 + $0xe8] sm:$0xff]  ;;  %v894_v37 = vadd.f32 %v3661_v52, %v3701_v9 }
 0x277   : > { %v1460_v40 = vmul.f32 0.01, %v2672_v27  ;;  %v1350_v41 = vpop.f32.mrb[8].mxu0  ;;  %1670 = vmatmul.mubr.f32.gmra.mrb[36].mxu1 %v1489_v33  ;;  %vm1428_vm6 = vcmp.gt.f32.partialorder %v2672_v27, 0.0  ;;  %v900_v52 = vadd.f32 %v3665_v54, %v3701_v9 }
 0x278   : > { %v2674_v43 = vadd.f32 %v1350_v41, %v868_v39  ;;  %v1352_v42 = vpop.f32.mrb[9].mxu0  ;;  %2636 = vmatpush3.bf16.msra.mxu1 %v2635_v26  ;;  %v1491_v14 = vsel %vm1427_vm7, %v2670_v38, %v1459_v32  ;;  %v2645_v38 = vpack.c.bf16 %v1877_v16, %v1876_v15  ;;  %v1861_v39 = vld [vmem:[#allocation11 + $0x58] sm:$0xff]  ;;  %v1862_v41 = vld [vmem:[#allocation11 + $0x60] sm:$0xff] }
 0x279   : > { %v2676_v6 = vadd.f32 %v1352_v42, %v870_v28  ;;  %v1492_v11 = vsel %vm1428_vm6, %v2672_v27, %v1460_v40  ;;  %2638 = vmatprep.subr.bf16.mxu1 %v2637_v25  ;;  %v1878_v28 = vld [vmem:[#allocation11 + $0xe0] sm:$0xff]  ;;  %v2647_v32 = vpack.c.bf16 %v1861_v39, %v1860_v24  ;;  %v904_v24 = vadd.f32 %v3667_v55, %v3697_v8 }
 0x27a   : > { %v1461_v13 = vmul.f32 0.01, %v2674_v43  ;;  %1675 = vmatprep.mubr.f32.mxu1 %v1492_v11  ;;  %vm1429_vm9 = vcmp.gt.f32.partialorder %v2674_v43, 0.0  ;;  %v2649_v40 = vpack.c.bf16 %v1879_v29, %v1878_v28  ;;  %v892_v11 = vadd.f32 %v3659_v51, %v3697_v8 }
 0x27b   : > { %v1462_v17 = vmul.f32 0.01, %v2676_v6  ;;  %v1356_v18 = vpop.f32.mrb[10].mxu0  ;;  %1676 = vmatmul.mubr.f32.gmra.mrb[38].mxu1 %v1491_v14  ;;  %vm1430_vm8 = vcmp.gt.f32.partialorder %v2676_v6, 0.0  ;;  %v898_v51 = vadd.f32 %v3663_v53, %v3697_v8  ;;  %v906_v39 = vadd.f32 %v3669_v56, %v3701_v9 }
 0x27c   : > { %v2678_v45 = vadd.f32 %v1356_v18, %v874_v44  ;;  %v1358_v19 = vpop.f32.mrb[11].mxu0  ;;  %2640 = vmatpush3.bf16.msra.mxu1 %v2639_v63  ;;  %v1493_v27 = vsel %vm1429_vm9, %v2674_v43, %v1461_v13  ;;  %v1863_v43 = vld [vmem:[#allocation11 + $0x68] sm:$0xff]  ;;  %v912_v55 = vadd.f32 %v3673_v58, %v3701_v9 }
 0x27d   : > { %v2680_v21 = vadd.f32 %v1358_v19, %v876_v36  ;;  %v1494_v23 = vsel %vm1430_vm8, %v2676_v6, %v1462_v17  ;;  %2642 = vmatprep.subr.bf16.mxu1 %v2641_v10  ;;  %v2651_v50 = vpack.c.bf16 %v1863_v43, %v1862_v41  ;;  %v916_v41 = vadd.f32 %v3675_v59, %v3697_v8 }
 0x27e   : > { %v1463_v26 = vmul.f32 0.01, %v2678_v45  ;;  %1681 = vmatprep.mubr.f32.mxu1 %v1494_v23  ;;  %vm1431_vm11 = vcmp.gt.f32.partialorder %v2678_v45, 0.0  ;;  %v924_v59 = vadd.f32 %v3681_v62, %v3701_v9 }
 0x27f   : > { %v1464_v25 = vmul.f32 0.01, %v2680_v21  ;;  %v1362_v30 = vpop.f32.mrb[12].mxu0  ;;  %1682 = vmatmul.mubr.f32.gmra.mrb[40].mxu1 %v1493_v27  ;;  %vm1432_vm10 = vcmp.gt.f32.partialorder %v2680_v21, 0.0 }
 0x280   : > { %v2682_v47 = vadd.f32 %v1362_v30, %v880_v46  ;;  %v1364_v31 = vpop.f32.mrb[13].mxu0  ;;  %2644 = vmatpush3.bf16.msra.mxu1 %v2643_v20  ;;  %v1495_v44 = vsel %vm1431_vm11, %v2678_v45, %v1463_v26 }
 0x281   : > { %v2684_v33 = vadd.f32 %v1364_v31, %v882_v22  ;;  %v1496_v35 = vsel %vm1432_vm10, %v2680_v21, %v1464_v25  ;;  %2646 = vmatprep.subr.bf16.mxu1 %v2645_v38 }
 0x282   : > { %v1465_v42 = vmul.f32 0.01, %v2682_v47  ;;  %1687 = vmatprep.mubr.f32.mxu1 %v1496_v35  ;;  %vm1433_vm13 = vcmp.gt.f32.partialorder %v2682_v47, 0.0 }
 0x283   : > { %v1466_v63 = vmul.f32 0.01, %v2684_v33  ;;  %v1368_v6 = vpop.f32.mrb[14].mxu0  ;;  %1688 = vmatmul.mubr.f32.gmra.mrb[42].mxu1 %v1495_v44  ;;  %vm1434_vm12 = vcmp.gt.f32.partialorder %v2684_v33, 0.0 }
 0x284   : > { %v2686_v49 = vadd.f32 %v1368_v6, %v886_v48  ;;  %v1370_v36 = vpop.f32.mrb[15].mxu0  ;;  %2648 = vmatpush3.bf16.msra.mxu1 %v2647_v32  ;;  %v1497_v14 = vsel %vm1433_vm13, %v2682_v47, %v1465_v42  ;;  %v910_v47 = vadd.f32 %v3671_v57, %v3697_v8  ;;  %v918_v57 = vadd.f32 %v3677_v60, %v3701_v9 }
 0x285   : > { %v2688_v10 = vadd.f32 %v1370_v36, %v888_v34  ;;  %v1498_v12 = vsel %vm1434_vm12, %v2684_v33, %v1466_v63  ;;  %2650 = vmatprep.subr.bf16.mxu1 %v2649_v40 }
 0x286   : > { %v1467_v13 = vmul.f32 0.01, %v2686_v49  ;;  %1693 = vmatprep.mubr.f32.mxu1 %v1498_v12  ;;  %vm1435_vm15 = vcmp.gt.f32.partialorder %v2686_v49, 0.0 }
 0x287   : > { %v1468_v15 = vmul.f32 0.01, %v2688_v10  ;;  %v1374_v16 = vpop.f32.mrb[16].mxu0  ;;  %1694 = vmatmul.mubr.f32.gmra.mrb[44].mxu1 %v1497_v14  ;;  %vm1436_vm14 = vcmp.gt.f32.partialorder %v2688_v10, 0.0 }
 0x288   : > { %v2690_v17 = vadd.f32 %v1374_v16, %v892_v11  ;;  %v1376_v18 = vpop.f32.mrb[17].mxu0  ;;  %2652 = vmatpush3.bf16.msra.mxu1 %v2651_v50  ;;  %v1499_v20 = vsel %vm1435_vm15, %v2686_v49, %v1467_v13  ;;  %v922_v11 = vadd.f32 %v3679_v61, %v3697_v8  ;;  %v928_v16 = vadd.f32 %v3683_v0, %v3697_v8 }
 0x289   : > { %v2692_v45 = vadd.f32 %v1376_v18, %v894_v37  ;;  %v1500_v19 = vsel %vm1436_vm14, %v2688_v10, %v1468_v15  ;;  %v930_v61 = vadd.f32 %v3685_v1, %v3701_v9  ;;  %v936_v0 = vadd.f32 %v3691_v4, %v3701_v9 }
 0x28a   : > { %v1469_v46 = vmul.f32 0.01, %v2690_v17  ;;  %1699 = vmatprep.mubr.f32.mxu1 %v1500_v19  ;;  %vm1437_vm1 = vcmp.gt.f32.partialorder %v2690_v17, 0.0 }
 0x28b   : > { %v1470_v21 = vmul.f32 0.01, %v2692_v45  ;;  %v1380_v22 = vpop.f32.mrb[18].mxu0  ;;  %1700 = vmatmul.mubr.f32.gmra.mrb[46].mxu1 %v1499_v20  ;;  %vm1438_vm0 = vcmp.gt.f32.partialorder %v2692_v45, 0.0  ;;  %v934_v20 = vadd.f32 %v3689_v3, %v3697_v8 }
 0x28c   : > { %v2694_v23 = vadd.f32 %v1380_v22, %v898_v51  ;;  %v1382_v38 = vpop.f32.mrb[19].mxu0  ;;  %v1501_v27 = vsel %vm1437_vm1, %v2690_v17, %v1469_v46 }
 0x28d   : > { %v2696_v53 = vadd.f32 %v1382_v38, %v900_v52  ;;  %v1502_v26 = vsel %vm1438_vm0, %v2692_v45, %v1470_v21 }
 0x28e   : > { %v1471_v54 = vmul.f32 0.01, %v2694_v23  ;;  %1705 = vmatprep.mubr.f32.mxu1 %v1502_v26  ;;  %vm1439_vm3 = vcmp.gt.f32.partialorder %v2694_v23, 0.0 }
 0x28f   : > { %v1472_v28 = vmul.f32 0.01, %v2696_v53  ;;  %v1386_v29 = vpop.f32.mrb[20].mxu0  ;;  %1706 = vmatmul.mubr.f32.gmra.mrb[48].mxu1 %v1501_v27  ;;  %vm1440_vm2 = vcmp.gt.f32.partialorder %v2696_v53, 0.0 }
 0x290   : > { %v2698_v25 = vadd.f32 %v1386_v29, %v904_v24  ;;  %v1388_v30 = vpop.f32.mrb[21].mxu0  ;;  %v1503_v32 = vsel %vm1439_vm3, %v2694_v23, %v1471_v54  ;;  %v1881_v29 = vld [vmem:[#allocation11 + $0xf8] sm:$0xff] }
 0x291   : > { %v2700_v31 = vadd.f32 %v1388_v30, %v906_v39  ;;  %v1504_v48 = vsel %vm1440_vm2, %v2696_v53, %v1472_v28  ;;  %v1880_v28 = vld [vmem:[#allocation11 + $0xf0] sm:$0xff] }
 0x292   : > { %v1473_v56 = vmul.f32 0.01, %v2698_v25  ;;  %1711 = vmatprep.mubr.f32.mxu1 %v1504_v48  ;;  %vm1441_vm5 = vcmp.gt.f32.partialorder %v2698_v25, 0.0  ;;  %v1864_v30 = vld [vmem:[#allocation11 + $0x70] sm:$0xff] }
 0x293   : > { %v1474_v33 = vmul.f32 0.01, %v2700_v31  ;;  %v1392_v34 = vpop.f32.mrb[22].mxu0  ;;  %1712 = vmatmul.mubr.f32.gmra.mrb[50].mxu1 %v1503_v32  ;;  %vm1442_vm4 = vcmp.gt.f32.partialorder %v2700_v31, 0.0 }
 0x294   : > { %v2702_v35 = vadd.f32 %v1392_v34, %v910_v47  ;;  %v1394_v40 = vpop.f32.mrb[23].mxu0  ;;  %v1505_v44 = vsel %vm1441_vm5, %v2698_v25, %v1473_v56  ;;  %v2653_v25 = vpack.c.bf16 %v1881_v29, %v1880_v28  ;;  %v1865_v47 = vld [vmem:[#allocation11 + $0x78] sm:$0xff] }
 0x295   : > { %v2704_v43 = vadd.f32 %v1394_v40, %v912_v55  ;;  %v1506_v42 = vsel %vm1442_vm4, %v2700_v31, %v1474_v33  ;;  %v2655_v31 = vpack.c.bf16 %v1865_v47, %v1864_v30  ;;  %v1581_v55 = vld [vmem:[#allocation10] sm:$0x3] }
 0x296   : > { %v1475_v58 = vmul.f32 0.01, %v2702_v35  ;;  %1717 = vmatprep.mubr.f32.mxu1 %v1506_v42  ;;  %vm1443_vm7 = vcmp.gt.f32.partialorder %v2702_v35, 0.0  ;;  %2654 = vmatprep.subr.bf16.mxu1 %v2653_v25  ;;  %v3763_v48 = vrot.slane %v1581_v55, %v769_v5  ;;  %v3767_v56 = vrot.slane %v1581_v55, %v773_v7 }
 0x297   : > { %v1476_v63 = vmul.f32 0.01, %v2704_v43  ;;  %v1398_v6 = vpop.f32.mrb[24].mxu0  ;;  %1718 = vmatmul.mubr.f32.gmra.mrb[52].mxu1 %v1505_v44  ;;  %vm1444_vm6 = vcmp.gt.f32.partialorder %v2704_v43, 0.0 }
 0x298   : > { %v2706_v49 = vadd.f32 %v1398_v6, %v916_v41  ;;  %v1400_v36 = vpop.f32.mrb[25].mxu0  ;;  %v1507_v37 = vsel %vm1443_vm7, %v2702_v35, %v1475_v58  ;;  %2656 = vmatpush3.bf16.msra.mxu1 %v2655_v31 }
 0x299   : > { %v2708_v50 = vadd.f32 %v1400_v36, %v918_v57  ;;  %v1508_v10 = vsel %vm1444_vm6, %v2704_v43, %v1476_v63 }
 0x29a   : > { %v1477_v60 = vmul.f32 0.01, %v2706_v49  ;;  %1723 = vmatprep.mubr.f32.mxu1 %v1508_v10  ;;  %vm1445_vm9 = vcmp.gt.f32.partialorder %v2706_v49, 0.0 }
 0x29b   : > { %v1478_v12 = vmul.f32 0.01, %v2708_v50  ;;  %v1404_v13 = vpop.f32.mrb[26].mxu0  ;;  %1724 = vmatmul.mubr.f32.gmra.mrb[54].mxu1 %v1507_v37  ;;  %vm1446_vm8 = vcmp.gt.f32.partialorder %v2708_v50, 0.0 }
 0x29c   : > { %v2710_v14 = vadd.f32 %v1404_v13, %v922_v11  ;;  %v1406_v15 = vpop.f32.mrb[27].mxu0  ;;  %v1509_v51 = vsel %vm1445_vm9, %v2706_v49, %v1477_v60 }
 0x29d   : > { %v2712_v17 = vadd.f32 %v1406_v15, %v924_v59  ;;  %v1510_v18 = vsel %vm1446_vm8, %v2708_v50, %v1478_v12 }
 0x29e   : > { %v1479_v62 = vmul.f32 0.01, %v2710_v14  ;;  %1729 = vmatprep.mubr.f32.mxu1 %v1510_v18  ;;  %vm1447_vm11 = vcmp.gt.f32.partialorder %v2710_v14, 0.0 }
 0x29f   : > { %v1480_v45 = vmul.f32 0.01, %v2712_v17  ;;  %v1410_v52 = vpop.f32.mrb[28].mxu0  ;;  %1730 = vmatmul.mubr.f32.gmra.mrb[56].mxu1 %v1509_v51  ;;  %vm1448_vm10 = vcmp.gt.f32.partialorder %v2712_v17, 0.0 }
 0x2a0   : > { %v2714_v19 = vadd.f32 %v1410_v52, %v928_v16  ;;  %v1412_v46 = vpop.f32.mrb[29].mxu0  ;;  %v1511_v23 = vsel %vm1447_vm11, %v2710_v14, %v1479_v62 }
 0x2a1   : > { %v2716_v21 = vadd.f32 %v1412_v46, %v930_v61  ;;  %v1512_v22 = vsel %vm1448_vm10, %v2712_v17, %v1480_v45 }
 0x2a2   : > { %v1481_v1 = vmul.f32 0.01, %v2714_v19  ;;  %1735 = vmatprep.mubr.f32.mxu1 %v1512_v22  ;;  %vm1449_vm13 = vcmp.gt.f32.partialorder %v2714_v19, 0.0 }
 0x2a3   : > { %v1482_v38 = vmul.f32 0.01, %v2716_v21  ;;  %v1416_v24 = vpop.f32.mrb[30].mxu0  ;;  %1736 = vmatmul.mubr.f32.gmra.mrb[58].mxu1 %v1511_v23  ;;  %vm1450_vm12 = vcmp.gt.f32.partialorder %v2716_v21, 0.0 }
 0x2a4   : > { %v2718_v53 = vadd.f32 %v1416_v24, %v934_v20  ;;  %v1418_v39 = vpop.f32.mrb[31].mxu0  ;;  %v1513_v3 = vsel %vm1449_vm13, %v2714_v19, %v1481_v1 }
 0x2a5   : > { %v2720_v26 = vadd.f32 %v1418_v39, %v936_v0  ;;  %v1514_v54 = vsel %vm1450_vm12, %v2716_v21, %v1482_v38 }
 0x2a6   : > { %v1483_v27 = vmul.f32 0.01, %v2718_v53  ;;  %1741 = vmatprep.mubr.f32.mxu1 %v1514_v54  ;;  %vm1451_vm15 = vcmp.gt.f32.partialorder %v2718_v53, 0.0 }
 0x2a7   : > { %v1484_v8 = vmul.f32 0.01, %v2720_v26  ;;  %1742 = vmatmul.mubr.f32.gmra.mrb[60].mxu1 %v1513_v3  ;;  %vm1452_vm14 = vcmp.gt.f32.partialorder %v2720_v26, 0.0 }
 0x2a8   : > { %v1515_v9 = vsel %vm1451_vm15, %v2718_v53, %v1483_v27 }
 0x2a9   : > { %v1516_v4 = vsel %vm1452_vm14, %v2720_v26, %v1484_v8 }
 0x2aa   : > { %1747 = vmatprep.mubr.f32.mxu1 %v1516_v4 }
 0x2ab   : > { %1748 = vmatmul.mubr.f32.gmra.mrb[62].mxu1 %v1515_v9 }
 0x342   : > { %v1659_v32 = vpop.f32.mrb[32].mxu1 }
 0x343   : > { %v1660_v33 = vadd.f32 %v1659_v32, %v3763_v48  ;;  %v1661_v34 = vpop.f32.mrb[33].mxu1 }
 0x344   : > { %v1662_v35 = vadd.f32 %v1661_v34, %v3767_v56 }
 0x345   : > { %v1786_v40 = vmul.f32 0.01, %v1660_v33  ;;  %vm1754_vm0 = vcmp.gt.f32.partialorder %v1660_v33, 0.0 }
 0x346   : > { %v1787_v41 = vmul.f32 0.01, %v1662_v35  ;;  %v1665_v43 = vpop.f32.mrb[34].mxu1  ;;  %vm1755_vm1 = vcmp.gt.f32.partialorder %v1662_v35, 0.0 }
 0x347   : > { %v1666_v57 = vadd.f32 %v1665_v43, %v3763_v48  ;;  %v1667_v42 = vpop.f32.mrb[35].mxu1  ;;  %v1818_v2 = vsel %vm1754_vm0, %v1660_v33, %v1786_v40 }
 0x348   : > { %v1668_v5 = vadd.f32 %v1667_v42, %v3767_v56  ;;  %v1819_v58 = vsel %vm1755_vm1, %v1662_v35, %v1787_v41 }
 0x349   : > { %v1788_v7 = vmul.f32 0.01, %v1666_v57  ;;  %1953 = vmatprep.mubr.f32.mxu1 %v1819_v58  ;;  %vm1756_vm3 = vcmp.gt.f32.partialorder %v1666_v57, 0.0 }
 0x34a   : > { %v1789_v44 = vmul.f32 0.01, %v1668_v5  ;;  %v1671_v63 = vpop.f32.mrb[36].mxu1  ;;  %1954 = vmatmul.mubr.f32.vlgmr.msra.gmra.mrb[64].mxu1 %v1818_v2  ;;  %vm1757_vm2 = vcmp.gt.f32.partialorder %v1668_v5, 0.0 }
 0x34b   : > { %v1672_v6 = vadd.f32 %v1671_v63, %v3763_v48  ;;  %v1673_v49 = vpop.f32.mrb[37].mxu1  ;;  %v1820_v59 = vsel %vm1756_vm3, %v1666_v57, %v1788_v7 }
 0x34c   : > { %v1674_v36 = vadd.f32 %v1673_v49, %v3767_v56  ;;  %v1821_v11 = vsel %vm1757_vm2, %v1668_v5, %v1789_v44 }
 0x34d   : > { %v1790_v50 = vmul.f32 0.01, %v1672_v6  ;;  %1958 = vmatprep.mubr.f32.mxu1 %v1821_v11  ;;  %vm1758_vm5 = vcmp.gt.f32.partialorder %v1672_v6, 0.0 }
 0x34e   : > { %v1791_v10 = vmul.f32 0.01, %v1674_v36  ;;  %v1677_v60 = vpop.f32.mrb[38].mxu1  ;;  %1959 = vmatmul.mubr.f32.gmra.mrb[66].mxu1 %v1820_v59  ;;  %vm1759_vm4 = vcmp.gt.f32.partialorder %v1674_v36, 0.0 }
 0x34f   : > { %v1678_v37 = vadd.f32 %v1677_v60, %v3763_v48  ;;  %v1679_v12 = vpop.f32.mrb[39].mxu1  ;;  %v1822_v16 = vsel %vm1758_vm5, %v1672_v6, %v1790_v50 }
 0x350   : > { %v1680_v13 = vadd.f32 %v1679_v12, %v3767_v56  ;;  %v1823_v14 = vsel %vm1759_vm4, %v1674_v36, %v1791_v10 }
 0x351   : > { %v1792_v15 = vmul.f32 0.01, %v1678_v37  ;;  %1963 = vmatprep.mubr.f32.mxu1 %v1823_v14  ;;  %vm1760_vm7 = vcmp.gt.f32.partialorder %v1678_v37, 0.0 }
 0x352   : > { %v1793_v17 = vmul.f32 0.01, %v1680_v13  ;;  %v1683_v61 = vpop.f32.mrb[40].mxu1  ;;  %1964 = vmatmul.mubr.f32.gmra.mrb[68].mxu1 %v1822_v16  ;;  %vm1761_vm6 = vcmp.gt.f32.partialorder %v1680_v13, 0.0 }
 0x353   : > { %v1684_v18 = vadd.f32 %v1683_v61, %v3763_v48  ;;  %v1685_v62 = vpop.f32.mrb[41].mxu1  ;;  %v1824_v19 = vsel %vm1760_vm7, %v1678_v37, %v1792_v15 }
 0x354   : > { %v1686_v51 = vadd.f32 %v1685_v62, %v3767_v56  ;;  %v1825_v45 = vsel %vm1761_vm6, %v1680_v13, %v1793_v17 }
 0x355   : > { %v1794_v52 = vmul.f32 0.01, %v1684_v18  ;;  %1968 = vmatprep.mubr.f32.mxu1 %v1825_v45  ;;  %vm1762_vm9 = vcmp.gt.f32.partialorder %v1684_v18, 0.0 }
 0x356   : > { %v1795_v46 = vmul.f32 0.01, %v1686_v51  ;;  %v1689_v20 = vpop.f32.mrb[42].mxu1  ;;  %1969 = vmatmul.mubr.f32.gmra.mrb[70].mxu1 %v1824_v19  ;;  %vm1763_vm8 = vcmp.gt.f32.partialorder %v1686_v51, 0.0 }
 0x357   : > { %v1690_v21 = vadd.f32 %v1689_v20, %v3763_v48  ;;  %v1691_v0 = vpop.f32.mrb[43].mxu1  ;;  %v1826_v38 = vsel %vm1762_vm9, %v1684_v18, %v1794_v52 }
 0x358   : > { %v1692_v22 = vadd.f32 %v1691_v0, %v3767_v56  ;;  %v1827_v1 = vsel %vm1763_vm8, %v1686_v51, %v1795_v46 }
 0x359   : > { %v1796_v23 = vmul.f32 0.01, %v1690_v21  ;;  %1973 = vmatprep.mubr.f32.mxu1 %v1827_v1  ;;  %vm1764_vm11 = vcmp.gt.f32.partialorder %v1690_v21, 0.0 }
 0x35a   : > { %v1797_v24 = vmul.f32 0.01, %v1692_v22  ;;  %v1695_v53 = vpop.f32.mrb[44].mxu1  ;;  %1974 = vmatmul.mubr.f32.gmra.mrb[72].mxu1 %v1826_v38  ;;  %vm1765_vm10 = vcmp.gt.f32.partialorder %v1692_v22, 0.0 }
 0x35b   : > { %v1696_v39 = vadd.f32 %v1695_v53, %v3763_v48  ;;  %v1697_v26 = vpop.f32.mrb[45].mxu1  ;;  %v1828_v8 = vsel %vm1764_vm11, %v1690_v21, %v1796_v23 }
 0x35c   : > { %v1698_v54 = vadd.f32 %v1697_v26, %v3767_v56  ;;  %v1829_v27 = vsel %vm1765_vm10, %v1692_v22, %v1797_v24 }
 0x35d   : > { %v1798_v3 = vmul.f32 0.01, %v1696_v39  ;;  %1978 = vmatprep.mubr.f32.mxu1 %v1829_v27  ;;  %vm1766_vm13 = vcmp.gt.f32.partialorder %v1696_v39, 0.0 }
 0x35e   : > { %v1799_v4 = vmul.f32 0.01, %v1698_v54  ;;  %v1701_v9 = vpop.f32.mrb[46].mxu1  ;;  %1979 = vmatmul.mubr.f32.gmra.mrb[74].mxu1 %v1828_v8  ;;  %vm1767_vm12 = vcmp.gt.f32.partialorder %v1698_v54, 0.0 }
 0x35f   : > { %v1702_v28 = vadd.f32 %v1701_v9, %v3763_v48  ;;  %v1703_v29 = vpop.f32.mrb[47].mxu1  ;;  %v1830_v31 = vsel %vm1766_vm13, %v1696_v39, %v1798_v3 }
 0x360   : > { %v1704_v25 = vadd.f32 %v1703_v29, %v3767_v56  ;;  %v1831_v30 = vsel %vm1767_vm12, %v1698_v54, %v1799_v4 }
 0x361   : > { %v1800_v47 = vmul.f32 0.01, %v1702_v28  ;;  %1983 = vmatprep.mubr.f32.mxu1 %v1831_v30  ;;  %vm1768_vm15 = vcmp.gt.f32.partialorder %v1702_v28, 0.0 }
 0x362   : > { %v1801_v55 = vmul.f32 0.01, %v1704_v25  ;;  %v1707_v32 = vpop.f32.mrb[48].mxu1  ;;  %1984 = vmatmul.mubr.f32.gmra.mrb[76].mxu1 %v1830_v31  ;;  %vm1769_vm14 = vcmp.gt.f32.partialorder %v1704_v25, 0.0 }
 0x363   : > { %v1708_v33 = vadd.f32 %v1707_v32, %v3763_v48  ;;  %v1709_v34 = vpop.f32.mrb[49].mxu1  ;;  %v1832_v43 = vsel %vm1768_vm15, %v1702_v28, %v1800_v47 }
 0x364   : > { %v1710_v35 = vadd.f32 %v1709_v34, %v3767_v56  ;;  %v1833_v40 = vsel %vm1769_vm14, %v1704_v25, %v1801_v55 }
 0x365   : > { %v1802_v41 = vmul.f32 0.01, %v1708_v33  ;;  %1988 = vmatprep.mubr.f32.mxu1 %v1833_v40  ;;  %vm1770_vm1 = vcmp.gt.f32.partialorder %v1708_v33, 0.0 }
 0x366   : > { %v1803_v57 = vmul.f32 0.01, %v1710_v35  ;;  %v1713_v42 = vpop.f32.mrb[50].mxu1  ;;  %1989 = vmatmul.mubr.f32.gmra.mrb[78].mxu1 %v1832_v43  ;;  %vm1771_vm0 = vcmp.gt.f32.partialorder %v1710_v35, 0.0 }
 0x367   : > { %v1714_v5 = vadd.f32 %v1713_v42, %v3763_v48  ;;  %v1715_v58 = vpop.f32.mrb[51].mxu1  ;;  %v1834_v63 = vsel %vm1770_vm1, %v1708_v33, %v1802_v41  ;;  %v3802_v41 = vld [vmem:[#allocation13] ss:$0 sm:$0xff] }
 0x368   : > { %v1716_v2 = vadd.f32 %v1715_v58, %v3767_v56  ;;  %v1835_v7 = vsel %vm1771_vm0, %v1710_v35, %v1803_v57 }
 0x369   : > { %v1804_v44 = vmul.f32 0.01, %v1714_v5  ;;  %1993 = vmatprep.mubr.f32.mxu1 %v1835_v7  ;;  %vm1772_vm3 = vcmp.gt.f32.partialorder %v1714_v5, 0.0 }
 0x36a   : > { %v1805_v6 = vmul.f32 0.01, %v1716_v2  ;;  %v1719_v49 = vpop.f32.mrb[52].mxu1  ;;  %1994 = vmatmul.mubr.f32.gmra.mrb[80].mxu1 %v1834_v63  ;;  %vm1773_vm2 = vcmp.gt.f32.partialorder %v1716_v2, 0.0 }
 0x36b   : > { %v1720_v36 = vadd.f32 %v1719_v49, %v3763_v48  ;;  %v1721_v11 = vpop.f32.mrb[53].mxu1  ;;  %v1836_v60 = vsel %vm1772_vm3, %v1714_v5, %v1804_v44 }
 0x36c   : > { %v1722_v50 = vadd.f32 %v1721_v11, %v3767_v56  ;;  %v1837_v59 = vsel %vm1773_vm2, %v1716_v2, %v1805_v6 }
 0x36d   : > { %v1806_v10 = vmul.f32 0.01, %v1720_v36  ;;  %1998 = vmatprep.mubr.f32.mxu1 %v1837_v59  ;;  %vm1774_vm5 = vcmp.gt.f32.partialorder %v1720_v36, 0.0 }
 0x36e   : > { %v1807_v37 = vmul.f32 0.01, %v1722_v50  ;;  %v1725_v12 = vpop.f32.mrb[54].mxu1  ;;  %1999 = vmatmul.mubr.f32.gmra.mrb[82].mxu1 %v1836_v60  ;;  %vm1775_vm4 = vcmp.gt.f32.partialorder %v1722_v50, 0.0 }
 0x36f   : > { %v1726_v13 = vadd.f32 %v1725_v12, %v3763_v48  ;;  %v1727_v14 = vpop.f32.mrb[55].mxu1  ;;  %v1838_v61 = vsel %vm1774_vm5, %v1720_v36, %v1806_v10 }
 0x370   : > { %v1728_v15 = vadd.f32 %v1727_v14, %v3767_v56  ;;  %v1839_v16 = vsel %vm1775_vm4, %v1722_v50, %v1807_v37 }
 0x371   : > { %v1808_v17 = vmul.f32 0.01, %v1726_v13  ;;  %2003 = vmatprep.mubr.f32.mxu1 %v1839_v16  ;;  %vm1776_vm7 = vcmp.gt.f32.partialorder %v1726_v13, 0.0 }
 0x372   : > { %v1809_v18 = vmul.f32 0.01, %v1728_v15  ;;  %v1731_v62 = vpop.f32.mrb[56].mxu1  ;;  %2004 = vmatmul.mubr.f32.gmra.mrb[84].mxu1 %v1838_v61  ;;  %vm1777_vm6 = vcmp.gt.f32.partialorder %v1728_v15, 0.0 }
 0x373   : > { %v1732_v51 = vadd.f32 %v1731_v62, %v3763_v48  ;;  %v1733_v45 = vpop.f32.mrb[57].mxu1  ;;  %v1840_v20 = vsel %vm1776_vm7, %v1726_v13, %v1808_v17 }
 0x374   : > { %v1734_v52 = vadd.f32 %v1733_v45, %v3767_v56  ;;  %v1841_v19 = vsel %vm1777_vm6, %v1728_v15, %v1809_v18 }
 0x375   : > { %v1810_v46 = vmul.f32 0.01, %v1732_v51  ;;  %2008 = vmatprep.mubr.f32.mxu1 %v1841_v19  ;;  %vm1778_vm9 = vcmp.gt.f32.partialorder %v1732_v51, 0.0 }
 0x376   : > { %v1811_v21 = vmul.f32 0.01, %v1734_v52  ;;  %v1737_v0 = vpop.f32.mrb[58].mxu1  ;;  %2009 = vmatmul.mubr.f32.gmra.mrb[86].mxu1 %v1840_v20  ;;  %vm1779_vm8 = vcmp.gt.f32.partialorder %v1734_v52, 0.0 }
 0x377   : > { %v1738_v22 = vadd.f32 %v1737_v0, %v3763_v48  ;;  %v1739_v1 = vpop.f32.mrb[59].mxu1  ;;  %v1842_v53 = vsel %vm1778_vm9, %v1732_v51, %v1810_v46 }
 0x378   : > { %v1740_v23 = vadd.f32 %v1739_v1, %v3767_v56  ;;  %v1843_v38 = vsel %vm1779_vm8, %v1734_v52, %v1811_v21 }
 0x379   : > { %v1812_v24 = vmul.f32 0.01, %v1738_v22  ;;  %2013 = vmatprep.mubr.f32.mxu1 %v1843_v38  ;;  %vm1780_vm11 = vcmp.gt.f32.partialorder %v1738_v22, 0.0 }
 0x37a   : > { %v1813_v39 = vmul.f32 0.01, %v1740_v23  ;;  %v1743_v26 = vpop.f32.mrb[60].mxu1  ;;  %2014 = vmatmul.mubr.f32.gmra.mrb[88].mxu1 %v1842_v53  ;;  %vm1781_vm10 = vcmp.gt.f32.partialorder %v1740_v23, 0.0 }
 0x37b   : > { %v1744_v54 = vadd.f32 %v1743_v26, %v3763_v48  ;;  %v1745_v27 = vpop.f32.mrb[61].mxu1  ;;  %v1844_v9 = vsel %vm1780_vm11, %v1738_v22, %v1812_v24 }
 0x37c   : > { %v1746_v3 = vadd.f32 %v1745_v27, %v3767_v56  ;;  %v1845_v8 = vsel %vm1781_vm10, %v1740_v23, %v1813_v39 }
 0x37d   : > { %v1814_v4 = vmul.f32 0.01, %v1744_v54  ;;  %2018 = vmatprep.mubr.f32.mxu1 %v1845_v8  ;;  %vm1782_vm13 = vcmp.gt.f32.partialorder %v1744_v54, 0.0 }
 0x37e   : > { %v1815_v28 = vmul.f32 0.01, %v1746_v3  ;;  %v1749_v29 = vpop.f32.mrb[62].mxu1  ;;  %2019 = vmatmul.mubr.f32.gmra.mrb[90].mxu1 %v1844_v9  ;;  %vm1783_vm12 = vcmp.gt.f32.partialorder %v1746_v3, 0.0 }
 0x37f   : > { %v1750_v25 = vadd.f32 %v1749_v29, %v3763_v48  ;;  %v1751_v30 = vpop.f32.mrb[63].mxu1  ;;  %v1846_v32 = vsel %vm1782_vm13, %v1744_v54, %v1814_v4 }
 0x380   : > { %v1752_v47 = vadd.f32 %v1751_v30, %v3767_v56  ;;  %v1847_v31 = vsel %vm1783_vm12, %v1746_v3, %v1815_v28 }
 0x381   : > { %v1816_v55 = vmul.f32 0.01, %v1750_v25  ;;  %2023 = vmatprep.mubr.f32.mxu1 %v1847_v31  ;;  %vm1784_vm15 = vcmp.gt.f32.partialorder %v1750_v25, 0.0 }
 0x382   : > { %v1817_v33 = vmul.f32 0.01, %v1752_v47  ;;  %2024 = vmatmul.mubr.f32.gmra.mrb[92].mxu1 %v1846_v32  ;;  %vm1785_vm14 = vcmp.gt.f32.partialorder %v1752_v47, 0.0 }
 0x383   : > { %v1848_v35 = vsel %vm1784_vm15, %v1750_v25, %v1816_v55 }
 0x384   : > { %v1849_v34 = vsel %vm1785_vm14, %v1752_v47, %v1817_v33 }
 0x385   : > { %2028 = vmatprep.mubr.f32.mxu1 %v1849_v34 }
 0x386   : > { %2029 = vmatmul.mubr.f32.gmra.mrb[94].mxu1 %v1848_v35 }
 0x41d   : > { %v2257_v40 = vpop.f32.mrb[64].mxu1 }
 0x41e   : > { %v2258_v48 = vpop.f32.mrb[65].mxu1 }
 0x41f   : > { %v2259_v43 = vadd.f32 %v2258_v48, %v2257_v40 }
 0x421   : > { %v1956_v56 = vadd.f32 %v2259_v43, %v3802_v41  ;;  %v2260_v57 = vpop.f32.mrb[66].mxu1 }
 0x422   : > { %v2261_v42 = vpop.f32.mrb[67].mxu1 }
 0x423   : > { %2034 = vst [vmem:[%s3805_s10] sm:$0xff] %v1956_v56  ;;  %v2262_v5 = vadd.f32 %v2261_v42, %v2260_v57 }
 0x425   : > { %v1961_v58 = vadd.f32 %v2262_v5, %v3802_v41  ;;  %v2263_v2 = vpop.f32.mrb[68].mxu1 }
 0x426   : > { %v2264_v7 = vpop.f32.mrb[69].mxu1 }
 0x427   : > { %2035 = vst [vmem:[%s3805_s10 + $0x8] sm:$0xff] %v1961_v58  ;;  %v2265_v44 = vadd.f32 %v2264_v7, %v2263_v2 }
 0x429   : > { %v1966_v63 = vadd.f32 %v2265_v44, %v3802_v41  ;;  %v2266_v6 = vpop.f32.mrb[70].mxu1 }
 0x42a   : > { %v2267_v49 = vpop.f32.mrb[71].mxu1 }
 0x42b   : > { %2036 = vst [vmem:[%s3805_s10 + $0x10] sm:$0xff] %v1966_v63  ;;  %v2268_v36 = vadd.f32 %v2267_v49, %v2266_v6 }
 0x42d   : > { %v1971_v11 = vadd.f32 %v2268_v36, %v3802_v41  ;;  %v2269_v50 = vpop.f32.mrb[72].mxu1 }
 0x42e   : > { %v2270_v59 = vpop.f32.mrb[73].mxu1 }
 0x42f   : > { %2037 = vst [vmem:[%s3805_s10 + $0x18] sm:$0xff] %v1971_v11  ;;  %v2271_v10 = vadd.f32 %v2270_v59, %v2269_v50 }
 0x431   : > { %v1976_v60 = vadd.f32 %v2271_v10, %v3802_v41  ;;  %v2272_v37 = vpop.f32.mrb[74].mxu1 }
 0x432   : > { %v2273_v12 = vpop.f32.mrb[75].mxu1 }
 0x433   : > { %2038 = vst [vmem:[%s3805_s10 + $0x20] sm:$0xff] %v1976_v60  ;;  %v2274_v13 = vadd.f32 %v2273_v12, %v2272_v37 }
 0x435   : > { %v1981_v14 = vadd.f32 %v2274_v13, %v3802_v41  ;;  %v2275_v15 = vpop.f32.mrb[76].mxu1 }
 0x436   : > { %v2276_v16 = vpop.f32.mrb[77].mxu1 }
 0x437   : > { %2039 = vst [vmem:[%s3805_s10 + $0x28] sm:$0xff] %v1981_v14  ;;  %v2277_v17 = vadd.f32 %v2276_v16, %v2275_v15 }
 0x439   : > { %v1986_v61 = vadd.f32 %v2277_v17, %v3802_v41  ;;  %v2278_v18 = vpop.f32.mrb[78].mxu1 }
 0x43a   : > { %v2279_v62 = vpop.f32.mrb[79].mxu1 }
 0x43b   : > { %2040 = vst [vmem:[%s3805_s10 + $0x30] sm:$0xff] %v1986_v61  ;;  %v2280_v51 = vadd.f32 %v2279_v62, %v2278_v18 }
 0x43d   : > { %v1991_v45 = vadd.f32 %v2280_v51, %v3802_v41  ;;  %v2281_v52 = vpop.f32.mrb[80].mxu1 }
 0x43e   : > { %v2282_v19 = vpop.f32.mrb[81].mxu1 }
 0x43f   : > { %2041 = vst [vmem:[%s3805_s10 + $0x38] sm:$0xff] %v1991_v45  ;;  %v2283_v46 = vadd.f32 %v2282_v19, %v2281_v52 }
 0x441   : > { %v1996_v20 = vadd.f32 %v2283_v46, %v3802_v41  ;;  %v2284_v21 = vpop.f32.mrb[82].mxu1 }
 0x442   : > { %v2285_v0 = vpop.f32.mrb[83].mxu1 }
 0x443   : > { %2042 = vst [vmem:[%s3805_s10 + $0x40] sm:$0xff] %v1996_v20  ;;  %v2286_v22 = vadd.f32 %v2285_v0, %v2284_v21 }
 0x445   : > { %v2001_v1 = vadd.f32 %v2286_v22, %v3802_v41  ;;  %v2287_v23 = vpop.f32.mrb[84].mxu1 }
 0x446   : > { %v2288_v38 = vpop.f32.mrb[85].mxu1 }
 0x447   : > { %2043 = vst [vmem:[%s3805_s10 + $0x48] sm:$0xff] %v2001_v1  ;;  %v2289_v24 = vadd.f32 %v2288_v38, %v2287_v23 }
 0x449   : > { %v2006_v53 = vadd.f32 %v2289_v24, %v3802_v41  ;;  %v2290_v39 = vpop.f32.mrb[86].mxu1 }
 0x44a   : > { %v2291_v26 = vpop.f32.mrb[87].mxu1 }
 0x44b   : > { %2044 = vst [vmem:[%s3805_s10 + $0x50] sm:$0xff] %v2006_v53  ;;  %v2292_v54 = vadd.f32 %v2291_v26, %v2290_v39 }
 0x44d   : > { %v2011_v27 = vadd.f32 %v2292_v54, %v3802_v41  ;;  %v2293_v3 = vpop.f32.mrb[88].mxu1 }
 0x44e   : > { %v2294_v8 = vpop.f32.mrb[89].mxu1 }
 0x44f   : > { %2045 = vst [vmem:[%s3805_s10 + $0x58] sm:$0xff] %v2011_v27  ;;  %v2295_v4 = vadd.f32 %v2294_v8, %v2293_v3 }
 0x451   : > { %v2016_v9 = vadd.f32 %v2295_v4, %v3802_v41  ;;  %v2296_v28 = vpop.f32.mrb[90].mxu1 }
 0x452   : > { %v2297_v29 = vpop.f32.mrb[91].mxu1 }
 0x453   : > { %2046 = vst [vmem:[%s3805_s10 + $0x60] sm:$0xff] %v2016_v9  ;;  %v2298_v25 = vadd.f32 %v2297_v29, %v2296_v28 }
 0x455   : > { %v2021_v30 = vadd.f32 %v2298_v25, %v3802_v41  ;;  %v2299_v47 = vpop.f32.mrb[92].mxu1 }
 0x456   : > { %v2300_v31 = vpop.f32.mrb[93].mxu1 }
 0x457   : > { %2047 = vst [vmem:[%s3805_s10 + $0x68] sm:$0xff] %v2021_v30  ;;  %v2301_v55 = vadd.f32 %v2300_v31, %v2299_v47 }
 0x459   : > { %v2026_v32 = vadd.f32 %v2301_v55, %v3802_v41  ;;  %v2302_v33 = vpop.f32.mrb[94].mxu1 }
 0x45a   : > { %v2303_v34 = vpop.f32.mrb[95].mxu1 }
 0x45b   : > { %2048 = vst [vmem:[%s3805_s10 + $0x70] sm:$0xff] %v2026_v32  ;;  %v2304_v35 = vadd.f32 %v2303_v34, %v2302_v33 }
 0x45d   : > { %v2031_v40 = vadd.f32 %v2304_v35, %v3802_v41 }
 0x45f   : > { %2049 = vst [vmem:[%s3805_s10 + $0x78] sm:$0xff] %v2031_v40 }
 0x460   : > { %3111 = shalt.err (!%p3108_p8)
}
 0x461   : > { %s3112_s21 = scalar_lea.hbm %s3841_s22, 2048  ;;  %s3116_s8 = scalar_lea.hbm %s3896_s7, 4096 }
 0x462   : > { %p3113_p4 = scmp.ne.s32.totalorder %s3841_s22, %s3112_s21  ;;  %p3117_p0 = scmp.lt.u32.totalorder %s3841_s22, %s3896_s7 }
 0x463   : > { %p3118_p5 = scmp.lt.u32.totalorder %s3116_s8, %s3112_s21  ;;  %p3120_p6 = scmp.lt.u32.totalorder %s3112_s21, %s3841_s22 }
 0x464   : > { %p3114_p10 = pnand %p3113_p4, %p3918_p9 }
 0x465   : > { %p3119_p7 = por %p3118_p5, %p3117_p0 }
 0x466   : > { %p3115_p11 = pneg %p3114_p10 }
 0x467   : > { %p3121_p12 = por %p3120_p6, %p3119_p7 }
 0x469   : > { %p3122_p13 = pnand %p3121_p12, %p3115_p11 }
 0x46b   : > { %3125 = shalt.err (!%p3122_p13)
}
 0x46c   : > { %s3192_s16 = smov 128   ;;  %s3193_s19 = smov 8  }
 0x46d   : > { %2811 = dma.vmem_to_hbm [thread:$0]  (%p3918_p9), %s3843_s15, 2048, %s3841_s22, %s2051_s12, %s3192_s16, %s3192_s16, %s3193_s19  }
 0x46e PF: > { %s2079_s9 = sand.u32 1, %s3164_s24   ;;  %p3919_p1 = scmp.ne.s32.totalorder %s3909_s28, 0 }
 0x46f   : > { %p3920_p3 = scmp.ge.s32.totalorder %s3176_s27, 2  ;;  %s2080_s30 = scalar_lea.sflag [#allocation4], %s2079_s9 }
 0x471   : > { %p2837_p2 = pnand %p3920_p3, %p3919_p1 }
 0x473   : > { %3159 = dma.done.wait (!%p2837_p2), %s2080_s30, 2048  }
 0x474   : > { %3161 = vsyncadd (!%p2837_p2), %s2080_s30, 4294965248  ;;  %p23_p8 = scmp.ge.s32.totalorder %s3410_s11, 4   ;;  %s3921_s24 = smov %s3168_s25 }
 0x475   : > { %s3922_s25 = smov %s3172_s26  ;;  %s3923_s26 = smov %s3421_s18 }
 0x476   : > { %s3924_s27 = smov %s3410_s11  ;;  %25 = sbr.rel (!%p23_p8) target bundleno = 10 (0xa), region = 117 }
 0x47d   :  { %2085 = vsyncpa [#allocation3], 1 }
 0x47e   :  { %2087 = vsyncpa [#allocation3 + $0x1], 1 }
 0x47f   :  { %2088 = vsyncpa [#allocation6], 1 }
 0x480   :  { %2089 = vsyncpa [#allocation9], 1 }
 0x481   :  { %2090 = vsyncpa [#allocation12], 1 }
 0x482   :  { %2091 = vsyncpa [#allocation4], 1 }
 0x483   :  { %2093 = vsyncpa [#allocation4 + $0x1], 1 }

</bundles_post_ra>
